<compile_context>
chip_gen: v6e
topology: v6e:2x2x1
jax: 0.10.0
libtpu: 0.0.40
codegen_flags: <defaults>
</compile_context>

<pallas_src>
import functools

import jax
import jax.numpy as jnp
from jax import lax
from jax.experimental import pallas as pl
from jax.experimental.pallas import tpu as pltpu


# ---------------------------------------------------------------------------
# Fused kernel: conv1 + conv2 + conv3 (all as single im2col dots) + GAP + FC
# ---------------------------------------------------------------------------
def fcnn_kernel(x_ref, w1_ref, s1_ref, b1_ref,
                w2_ref, s2_ref, b2_ref,
                w3_ref, s3_ref, b3_ref,
                fcw_ref, fcb_ref,
                o_ref, gap_ref,
                *, l_tile, seq_len, ks1, ks2, ks3, r1p, r2p, winp):
    """One (batch-group nb, L-tile lt) grid step of the whole FCN forward.

    x_ref   : (1, B, L_pad, c_in) bf16 — zero-padded input, resident per group
    w1_ref  : (ks1*c_in, C1) bf16      w2_ref: (ks2*C1, C2)   w3_ref: (ks3*C2, C3)
    s*/b*   : (1, C*) f32 folded BN scale/bias
    fcw_ref : (C3, c_out) bf16         fcb_ref: (1, c_out) f32
    o_ref   : (1, B, c_out) f32 output block (written on the last L tile)
    gap_ref : (B, C3) f32 VMEM scratch — running per-sample GAP channel sums
    """
    lt = pl.program_id(1)
    n_lt = pl.num_programs(1)
    b_tile = x_ref.shape[1]
    c1 = w1_ref.shape[-1]
    c2 = w2_ref.shape[-1]
    c3 = w3_ref.shape[-1]

    r3 = l_tile                       # conv3 rows produced this tile
    off2 = (ks3 - 1) // 2             # conv2 rows start at position S - off2
    off1 = off2 + (ks2 - 1) // 2      # conv1 rows start at position S - off1
    start = lt * l_tile               # tile start (global == padded-index start)

    @pl.when(lt == 0)
    def _init():
        gap_ref[...] = jnp.zeros_like(gap_ref)

    # Input halo window for this tile (left/right zero pad baked in by wrapper).
    s0 = pl.multiple_of(start, 8)
    xwin = x_ref[0, :, pl.ds(s0, winp), :]                    # (B, winp, c_in) bf16

    # ---- conv block 1: in-kernel im2col (ks1 lane-concat taps) -> ONE MXU dot.
    xim = jnp.concatenate([xwin[:, t:t + r1p, :] for t in range(ks1)], axis=-1)
    y1 = jnp.dot(xim.reshape(b_tile * r1p, ks1 * x_ref.shape[-1]), w1_ref[...],
                 preferred_element_type=jnp.float32)
    y1 = jnp.maximum(y1 * s1_ref[...] + b1_ref[...], 0.0).reshape(b_tile, r1p, c1)
    p1 = (start - off1) + lax.broadcasted_iota(jnp.int32, (1, r1p, 1), 1)
    h1 = jnp.where((p1 >= 0) & (p1 < seq_len), y1, 0.0).astype(jnp.bfloat16)

    # ---- conv block 2: big-K im2col dot (K = ks2*C1), BN+ReLU epilogue in f32.
    h1im = jnp.concatenate([h1[:, t:t + r2p, :] for t in range(ks2)], axis=-1)
    y2 = jnp.dot(h1im.reshape(b_tile * r2p, ks2 * c1), w2_ref[...],
                 preferred_element_type=jnp.float32)
    y2 = jnp.maximum(y2 * s2_ref[...] + b2_ref[...], 0.0).reshape(b_tile, r2p, c2)
    p2 = (start - off2) + lax.broadcasted_iota(jnp.int32, (1, r2p, 1), 1)
    h2 = jnp.where((p2 >= 0) & (p2 < seq_len), y2, 0.0).astype(jnp.bfloat16)

    # ---- conv block 3: big-K im2col dot (K = ks3*C2).
    h2im = jnp.concatenate([h2[:, t:t + r3, :] for t in range(ks3)], axis=-1)
    y3 = jnp.dot(h2im.reshape(b_tile * r3, ks3 * c2), w3_ref[...],
                 preferred_element_type=jnp.float32)
    y3 = jnp.maximum(y3 * s3_ref[...] + b3_ref[...], 0.0).reshape(b_tile, r3, c3)
    p3 = start + lax.broadcasted_iota(jnp.int32, (1, r3, 1), 1)
    y3 = jnp.where(p3 < seq_len, y3, 0.0)                     # drop rows past true L

    # ---- GAP: per-sample channel sums across this L tile (reduction axis).
    gap_ref[...] += jnp.sum(y3, axis=1)

    # ---- finalize: mean over time + Linear, write logits for this batch group.
    @pl.when(lt == n_lt - 1)
    def _finalize():
        pooled = (gap_ref[...] * (1.0 / seq_len)).astype(jnp.bfloat16)  # (B, C3)
        logits = jnp.dot(pooled, fcw_ref[...],
                         preferred_element_type=jnp.float32) + fcb_ref[...]
        o_ref[0] = logits.astype(o_ref.dtype)


# ---------------------------------------------------------------------------
# Wrapper: layout, padding, weight reshapes, pallas_call plumbing
# ---------------------------------------------------------------------------
def fcnn_forward(x_ncl, params, l_tile=None, b_tile=None):
    """x_ncl: PyTorch layout (N, c_in, L) -> (N, c_out) logits."""
    N, c_in, L = x_ncl.shape
    (w1, s1, b1), (w2, s2, b2), (w3, s3, b3) = params["convs"]
    fc_w, fc_b = params["fc_w"], params["fc_b"]
    ks1, ks2, ks3 = w1.shape[0], w2.shape[0], w3.shape[0]
    C1, C2, C3 = w1.shape[-1], w2.shape[-1], w3.shape[-1]
    c_out = fc_w.shape[-1]

    def rup(a, m):
        return ((a + m - 1) // m) * m

    # Tile the time axis; ~1024 rows per MXU dot amortizes per-step overhead.
    if l_tile is None:
        l_tile = min(1024, rup(L, 8))
    l_tile = rup(l_tile, 8)
    num_lt = -(-L // l_tile)
    l_round = num_lt * l_tile

    # Pack batch samples per grid step for short sequences (single L tile).
    if b_tile is None:
        b_tile = max(1, min(N, 512 // l_round)) if num_lt == 1 else 1
    nb = -(-N // b_tile)
    n_pad = nb * b_tile

    # Per-tile row counts, padded to sublane multiples so (B,r,C)<->(B*r,C)
    # reshapes inside the kernel are tile-aligned (no relayout copies).
    r2p = rup(l_tile + ks3 - 1, 8)            # conv2 rows produced per tile
    r1p = rup(r2p + ks2 - 1, 8)               # conv1 rows produced per tile
    winp = rup(r1p + ks1 - 1, 8)              # input rows read per tile

    # 'same'-padding halo (left) + right padding so every tile's window exists.
    pad_left = (ks1 - 1) // 2 + (ks2 - 1) // 2 + (ks3 - 1) // 2
    l_pad = (num_lt - 1) * l_tile + winp      # total padded rows the kernel reads
    pad_right = l_pad - pad_left - L

    x_nlc = jnp.transpose(x_ncl, (0, 2, 1)).astype(jnp.bfloat16)   # NCL -> NLC
    x_pad = jnp.pad(x_nlc, ((0, n_pad - N), (pad_left, pad_right), (0, 0)))
    x_pad = x_pad.reshape(nb, b_tile, l_pad, c_in)

    # im2col weight layouts (one dot per layer):
    #   im2col index t*Cin + c  <=>  w[t, c, d]  => plain reshape is correct.
    w1_im = w1.reshape(ks1 * c_in, C1)
    w2_im = w2.reshape(ks2 * C1, C2)
    w3_im = w3.reshape(ks3 * C2, C3)

    def _resident(arr):   # whole array, fetched once, stays in VMEM
        return pl.BlockSpec(arr.shape, lambda n, t: (0,) * arr.ndim)

    kern = functools.partial(fcnn_kernel, l_tile=l_tile, seq_len=L,
                             ks1=ks1, ks2=ks2, ks3=ks3,
                             r1p=r1p, r2p=r2p, winp=winp)
    out = pl.pallas_call(
        kern,
        out_shape=jax.ShapeDtypeStruct((nb, b_tile, c_out), jnp.float32),
        grid=(nb, num_lt),
        in_specs=[
            # Full (zero-padded) input per batch group; re-used across lt steps
            # (block index does not change with lt -> no re-fetch).
            pl.BlockSpec((1, b_tile, l_pad, c_in), lambda n, t: (n, 0, 0, 0)),
            _resident(w1_im), _resident(s1), _resident(b1),
            _resident(w2_im), _resident(s2), _resident(b2),
            _resident(w3_im), _resident(s3), _resident(b3),
            _resident(fc_w), _resident(fc_b),
        ],
        out_specs=pl.BlockSpec((1, b_tile, c_out), lambda n, t: (n, 0, 0)),
        scratch_shapes=[pltpu.VMEM((b_tile, C3), jnp.float32)],
        compiler_params=pltpu.CompilerParams(
            dimension_semantics=("parallel", "arbitrary"),
            vmem_limit_bytes=32 * 1024 * 1024,
        ),
    )(x_pad, w1_im, s1, b1, w2_im, s2, b2, w3_im, s3, b3, fc_w, fc_b)
    return out.reshape(n_pad, c_out)[:N]


# ---------------------------------------------------------------------------
# Deterministic parameter construction (synthetic, not a checkpoint load)
# ---------------------------------------------------------------------------
def init_params(key, c_in, c_out, layers=(128, 256, 128), kss=(7, 5, 3)):
    eps = 1e-5
    chans = [c_in] + list(layers)
    convs = []
    for li, (ks, ci, co) in enumerate(zip(kss, chans[:-1], chans[1:])):
        kw, kg, kb, km, kv = jax.random.split(jax.random.fold_in(key, li), 5)
        w = 0.1 * jax.random.normal(kw, (ks, ci, co), jnp.float32)
        gamma = jax.random.uniform(kg, (co,), jnp.float32, 0.8, 1.2)
        beta = 0.1 * jax.random.normal(kb, (co,), jnp.float32)
        rmean = 0.1 * jax.random.normal(km, (co,), jnp.float32)
        rvar = jax.random.uniform(kv, (co,), jnp.float32, 0.5, 1.5)
        scale = gamma / jnp.sqrt(rvar + eps)
        bias = beta - rmean * scale
        convs.append((w.astype(jnp.bfloat16),
                      scale.reshape(1, co), bias.reshape(1, co)))
    kfw, kfb = jax.random.split(jax.random.fold_in(key, 100), 2)
    fc_w = (0.1 * jax.random.normal(kfw, (layers[-1], c_out), jnp.float32)
            ).astype(jnp.bfloat16)                      # (in, out)
    fc_b = 0.1 * jax.random.normal(kfb, (1, c_out), jnp.float32)
    return {"convs": convs, "fc_w": fc_w, "fc_b": fc_b}


# ---------------------------------------------------------------------------
# Pure-JAX reference (same math / same precision points) for correctness check
# ---------------------------------------------------------------------------
def ref_forward(x_ncl, params):
    h = jnp.transpose(x_ncl, (0, 2, 1)).astype(jnp.bfloat16)
    n_blocks = len(params["convs"])
    for i, (w, s, b) in enumerate(params["convs"]):
        ks = w.shape[0]
        L = h.shape[1]
        pad_l = (ks - 1) // 2
        pad_r = ks - 1 - pad_l
        hp = jnp.pad(h, ((0, 0), (pad_l, pad_r), (0, 0)))
        y = jnp.zeros((h.shape[0], L, w.shape[-1]), jnp.float32)
        for t in range(ks):
            y = y + jnp.einsum("nlc,cd->nld", hp[:, t:t + L, :], w[t],
                               preferred_element_type=jnp.float32)
        y = jnp.maximum(y * s + b, 0.0)
        h = y if i == n_blocks - 1 else y.astype(jnp.bfloat16)
    pooled = jnp.mean(h, axis=1)                                   # f32 (N, C3)
    return (jnp.dot(pooled.astype(jnp.bfloat16), params["fc_w"],
                    preferred_element_type=jnp.float32) + params["fc_b"])


if __name__ == "__main__":
    key = jax.random.PRNGKey(0)
    k_x, k_p, k_x2 = jax.random.split(key, 3)

    c_in, c_out = 4, 6
    params = init_params(k_p, c_in, c_out)

    # Test 1: short sequence -> single L tile, batch-packed grid step.
    N, L = 2, 16
    x = jax.random.normal(k_x, (N, c_in, L), jnp.float32)          # PyTorch NCL
    out = jax.block_until_ready(fcnn_forward(x, params))
    ref = jax.block_until_ready(ref_forward(x, params))
    assert out.shape == (N, c_out), out.shape
    err = jnp.max(jnp.abs(out - ref))
    assert jnp.allclose(out, ref, atol=1e-2, rtol=1e-2), f"max abs err = {err}"

    # Test 2: multi L-tile, L not a multiple of l_tile, padded batch group ->
    # exercises GAP accumulator init/finalize and left/right halo re-zeroing.
    N2, L2 = 3, 200
    x2 = jax.random.normal(k_x2, (N2, c_in, L2), jnp.float32)
    out2 = jax.block_until_ready(fcnn_forward(x2, params, l_tile=64, b_tile=2))
    ref2 = jax.block_until_ready(ref_forward(x2, params))
    assert out2.shape == (N2, c_out), out2.shape
    err2 = jnp.max(jnp.abs(out2 - ref2))
    assert jnp.allclose(out2, ref2, atol=1e-2, rtol=1e-2), f"max abs err = {err2}"

    print("KERNEL_OK")
</pallas_src>

<mosaic_0001>
module attributes {stable_mosaic.version = 11 : i64} {
  func.func @fcnn_kernel(%arg0: i32, %arg1: i32, %arg2: memref<1x2x40x4xbf16, #tpu.memory_space<vmem>>, %arg3: memref<28x128xbf16, #tpu.memory_space<vmem>>, %arg4: memref<1x128xf32, #tpu.memory_space<vmem>>, %arg5: memref<1x128xf32, #tpu.memory_space<vmem>>, %arg6: memref<640x256xbf16, #tpu.memory_space<vmem>>, %arg7: memref<1x256xf32, #tpu.memory_space<vmem>>, %arg8: memref<1x256xf32, #tpu.memory_space<vmem>>, %arg9: memref<768x128xbf16, #tpu.memory_space<vmem>>, %arg10: memref<1x128xf32, #tpu.memory_space<vmem>>, %arg11: memref<1x128xf32, #tpu.memory_space<vmem>>, %arg12: memref<128x6xbf16, #tpu.memory_space<vmem>>, %arg13: memref<1x6xf32, #tpu.memory_space<vmem>>, %arg14: memref<1x2x6xf32, #tpu.memory_space<vmem>>, %arg15: memref<2x128xf32, #tpu.memory_space<vmem>>) attributes {dimension_semantics = [#tpu.dimension_semantics<parallel>, #tpu.dimension_semantics<arbitrary>], iteration_bounds = array<i64: 1, 1>, scalar_prefetch = 0 : i64, scratch_operands = 1 : i64, tpu.core_type = #tpu.core_type<tc>, window_params = [{transform_indices = @transform_0, window_bounds = array<i64: 1, 2, 40, 4>}, {pipeline_mode = #tpu.pipeline_mode<synchronous>, transform_indices = @transform_1, window_bounds = array<i64: 28, 128>}, {pipeline_mode = #tpu.pipeline_mode<synchronous>, transform_indices = @transform_2, window_bounds = array<i64: 1, 128>}, {pipeline_mode = #tpu.pipeline_mode<synchronous>, transform_indices = @transform_3, window_bounds = array<i64: 1, 128>}, {pipeline_mode = #tpu.pipeline_mode<synchronous>, transform_indices = @transform_4, window_bounds = array<i64: 640, 256>}, {pipeline_mode = #tpu.pipeline_mode<synchronous>, transform_indices = @transform_5, window_bounds = array<i64: 1, 256>}, {pipeline_mode = #tpu.pipeline_mode<synchronous>, transform_indices = @transform_6, window_bounds = array<i64: 1, 256>}, {pipeline_mode = #tpu.pipeline_mode<synchronous>, transform_indices = @transform_7, window_bounds = array<i64: 768, 128>}, {pipeline_mode = #tpu.pipeline_mode<synchronous>, transform_indices = @transform_8, window_bounds = array<i64: 1, 128>}, {pipeline_mode = #tpu.pipeline_mode<synchronous>, transform_indices = @transform_9, window_bounds = array<i64: 1, 128>}, {pipeline_mode = #tpu.pipeline_mode<synchronous>, transform_indices = @transform_10, window_bounds = array<i64: 128, 6>}, {pipeline_mode = #tpu.pipeline_mode<synchronous>, transform_indices = @transform_11, window_bounds = array<i64: 1, 6>}, {transform_indices = @transform_12, window_bounds = array<i64: 1, 2, 6>}]} {
    %c16_i32 = arith.constant 16 : i32
    %0 = arith.muli %arg1, %c16_i32 : i32
    %c0_i32 = arith.constant 0 : i32
    %1 = arith.cmpi eq, %arg1, %c0_i32 : i32
    %2 = arith.extui %1 : i1 to i32
    %c0_i32_0 = arith.constant 0 : i32
    %3 = arith.cmpi ne, %2, %c0_i32_0 : i32
    scf.if %3 {
      %cst_41 = arith.constant 0.000000e+00 : f32
      %106 = vector.broadcast %cst_41 : f32 to vector<2x128xf32>
      %c0_42 = arith.constant 0 : index
      %c0_43 = arith.constant 0 : index
      %107 = vector.load %arg15[%c0_42, %c0_43] : memref<2x128xf32, #tpu.memory_space<vmem>>, vector<2x128xf32>
      tpu.vector_store %arg15[%c0_42, %c0_43], %106 {strides = array<i32>} : memref<2x128xf32, #tpu.memory_space<vmem>>, vector<2x128xf32>,
    } else {
    }
    %4 = tpu.assume_multiple %0, 8 : i32
    %c0 = arith.constant 0 : index
    %c0_1 = arith.constant 0 : index
    %5 = arith.index_cast %4 : i32 to index
    %c0_2 = arith.constant 0 : index
    %6 = vector.load %arg2[%c0, %c0_1, %5, %c0_2] : memref<1x2x40x4xbf16, #tpu.memory_space<vmem>>, vector<1x2x40x4xbf16>
    %7 = vector.shape_cast %6 : vector<1x2x40x4xbf16> to vector<2x40x4xbf16>
    %8 = vector.extract_strided_slice %7 {offsets = [0, 0, 0], sizes = [2, 32, 4], strides = [1, 1, 1]} : vector<2x40x4xbf16> to vector<2x32x4xbf16>
    %9 = vector.extract_strided_slice %7 {offsets = [0, 1, 0], sizes = [2, 32, 4], strides = [1, 1, 1]} : vector<2x40x4xbf16> to vector<2x32x4xbf16>
    %10 = vector.extract_strided_slice %7 {offsets = [0, 2, 0], sizes = [2, 32, 4], strides = [1, 1, 1]} : vector<2x40x4xbf16> to vector<2x32x4xbf16>
    %11 = vector.extract_strided_slice %7 {offsets = [0, 3, 0], sizes = [2, 32, 4], strides = [1, 1, 1]} : vector<2x40x4xbf16> to vector<2x32x4xbf16>
    %12 = vector.extract_strided_slice %7 {offsets = [0, 4, 0], sizes = [2, 32, 4], strides = [1, 1, 1]} : vector<2x40x4xbf16> to vector<2x32x4xbf16>
    %13 = vector.extract_strided_slice %7 {offsets = [0, 5, 0], sizes = [2, 32, 4], strides = [1, 1, 1]} : vector<2x40x4xbf16> to vector<2x32x4xbf16>
    %14 = vector.extract_strided_slice %7 {offsets = [0, 6, 0], sizes = [2, 32, 4], strides = [1, 1, 1]} : vector<2x40x4xbf16> to vector<2x32x4xbf16>
    %15 = tpu.concatenate %8, %9, %10, %11, %12, %13, %14 in 2 : vector<2x32x4xbf16>, vector<2x32x4xbf16>, vector<2x32x4xbf16>, vector<2x32x4xbf16>, vector<2x32x4xbf16>, vector<2x32x4xbf16>, vector<2x32x4xbf16> -> vector<2x32x28xbf16>
    %16 = vector.shape_cast %15 : vector<2x32x28xbf16> to vector<64x28xbf16>
    %c0_3 = arith.constant 0 : index
    %c0_4 = arith.constant 0 : index
    %17 = vector.load %arg3[%c0_3, %c0_4] : memref<28x128xbf16, #tpu.memory_space<vmem>>, vector<28x128xbf16>
    %cst = arith.constant dense<0.000000e+00> : vector<64x128xf32>
    %18 = tpu.matmul %16, %17, %cst {dimension_numbers = #tpu.dot_dimension_numbers<[1], [0], [0], [1], [0, 0, 1, 1], [], []>} : vector<64x28xbf16>, vector<28x128xbf16>, vector<64x128xf32> -> vector<64x128xf32>
    %c0_5 = arith.constant 0 : index
    %c0_6 = arith.constant 0 : index
    %19 = vector.load %arg4[%c0_5, %c0_6] : memref<1x128xf32, #tpu.memory_space<vmem>>, vector<1x128xf32>
    %20 = vector.broadcast %19 : vector<1x128xf32> to vector<64x128xf32>
    %21 = arith.mulf %18, %20 : vector<64x128xf32>
    %c0_7 = arith.constant 0 : index
    %c0_8 = arith.constant 0 : index
    %22 = vector.load %arg5[%c0_7, %c0_8] : memref<1x128xf32, #tpu.memory_space<vmem>>, vector<1x128xf32>
    %23 = vector.broadcast %22 : vector<1x128xf32> to vector<64x128xf32>
    %24 = arith.addf %21, %23 : vector<64x128xf32>
    %cst_9 = arith.constant 0.000000e+00 : f32
    %25 = vector.broadcast %cst_9 : f32 to vector<64x128xf32>
    %26 = arith.maximumf %24, %25 : vector<64x128xf32>
    %27 = vector.shape_cast %26 : vector<64x128xf32> to vector<2x32x128xf32>
    %c3_i32 = arith.constant 3 : i32
    %28 = arith.subi %0, %c3_i32 : i32
    %29 = tpu.iota {dimensions = array<i32: 1>} : vector<1x32x1xi32>
    %30 = vector.broadcast %28 : i32 to vector<1x32x1xi32>
    %31 = arith.addi %30, %29 : vector<1x32x1xi32>
    %c0_i32_10 = arith.constant 0 : i32
    %32 = vector.broadcast %c0_i32_10 : i32 to vector<1x32x1xi32>
    %33 = arith.cmpi sge, %31, %32 : vector<1x32x1xi32>
    %c16_i32_11 = arith.constant 16 : i32
    %34 = vector.broadcast %c16_i32_11 : i32 to vector<1x32x1xi32>
    %35 = arith.cmpi slt, %31, %34 : vector<1x32x1xi32>
    %36 = arith.andi %33, %35 : vector<1x32x1xi1>
    %cst_12 = arith.constant 0.000000e+00 : f32
    %37 = vector.shape_cast %36 : vector<1x32x1xi1> to vector<1x32x1xi1>
    %38 = vector.broadcast %37 : vector<1x32x1xi1> to vector<2x32x128xi1>
    %39 = vector.broadcast %cst_12 : f32 to vector<2x32x128xf32>
    %40 = arith.select %38, %27, %39 : vector<2x32x128xi1>, vector<2x32x128xf32>
    %41 = arith.truncf %40 : vector<2x32x128xf32> to vector<2x32x128xbf16>
    %42 = vector.extract_strided_slice %41 {offsets = [0, 0, 0], sizes = [2, 24, 128], strides = [1, 1, 1]} : vector<2x32x128xbf16> to vector<2x24x128xbf16>
    %43 = vector.extract_strided_slice %41 {offsets = [0, 1, 0], sizes = [2, 24, 128], strides = [1, 1, 1]} : vector<2x32x128xbf16> to vector<2x24x128xbf16>
    %44 = vector.extract_strided_slice %41 {offsets = [0, 2, 0], sizes = [2, 24, 128], strides = [1, 1, 1]} : vector<2x32x128xbf16> to vector<2x24x128xbf16>
    %45 = vector.extract_strided_slice %41 {offsets = [0, 3, 0], sizes = [2, 24, 128], strides = [1, 1, 1]} : vector<2x32x128xbf16> to vector<2x24x128xbf16>
    %46 = vector.extract_strided_slice %41 {offsets = [0, 4, 0], sizes = [2, 24, 128], strides = [1, 1, 1]} : vector<2x32x128xbf16> to vector<2x24x128xbf16>
    %47 = tpu.concatenate %42, %43, %44, %45, %46 in 2 : vector<2x24x128xbf16>, vector<2x24x128xbf16>, vector<2x24x128xbf16>, vector<2x24x128xbf16>, vector<2x24x128xbf16> -> vector<2x24x640xbf16>
    %48 = vector.shape_cast %47 : vector<2x24x640xbf16> to vector<48x640xbf16>
    %c0_13 = arith.constant 0 : index
    %c0_14 = arith.constant 0 : index
    %49 = vector.load %arg6[%c0_13, %c0_14] : memref<640x256xbf16, #tpu.memory_space<vmem>>, vector<640x256xbf16>
    %cst_15 = arith.constant dense<0.000000e+00> : vector<48x256xf32>
    %50 = tpu.matmul %48, %49, %cst_15 {dimension_numbers = #tpu.dot_dimension_numbers<[1], [0], [0], [1], [0, 0, 1, 1], [], []>} : vector<48x640xbf16>, vector<640x256xbf16>, vector<48x256xf32> -> vector<48x256xf32>
    %c0_16 = arith.constant 0 : index
    %c0_17 = arith.constant 0 : index
    %51 = vector.load %arg7[%c0_16, %c0_17] : memref<1x256xf32, #tpu.memory_space<vmem>>, vector<1x256xf32>
    %52 = vector.broadcast %51 : vector<1x256xf32> to vector<48x256xf32>
    %53 = arith.mulf %50, %52 : vector<48x256xf32>
    %c0_18 = arith.constant 0 : index
    %c0_19 = arith.constant 0 : index
    %54 = vector.load %arg8[%c0_18, %c0_19] : memref<1x256xf32, #tpu.memory_space<vmem>>, vector<1x256xf32>
    %55 = vector.broadcast %54 : vector<1x256xf32> to vector<48x256xf32>
    %56 = arith.addf %53, %55 : vector<48x256xf32>
    %cst_20 = arith.constant 0.000000e+00 : f32
    %57 = vector.broadcast %cst_20 : f32 to vector<48x256xf32>
    %58 = arith.maximumf %56, %57 : vector<48x256xf32>
    %59 = vector.shape_cast %58 : vector<48x256xf32> to vector<2x24x256xf32>
    %c1_i32 = arith.constant 1 : i32
    %60 = arith.subi %0, %c1_i32 : i32
    %61 = tpu.iota {dimensions = array<i32: 1>} : vector<1x24x1xi32>
    %62 = vector.broadcast %60 : i32 to vector<1x24x1xi32>
    %63 = arith.addi %62, %61 : vector<1x24x1xi32>
    %c0_i32_21 = arith.constant 0 : i32
    %64 = vector.broadcast %c0_i32_21 : i32 to vector<1x24x1xi32>
    %65 = arith.cmpi sge, %63, %64 : vector<1x24x1xi32>
    %c16_i32_22 = arith.constant 16 : i32
    %66 = vector.broadcast %c16_i32_22 : i32 to vector<1x24x1xi32>
    %67 = arith.cmpi slt, %63, %66 : vector<1x24x1xi32>
    %68 = arith.andi %65, %67 : vector<1x24x1xi1>
    %cst_23 = arith.constant 0.000000e+00 : f32
    %69 = vector.shape_cast %68 : vector<1x24x1xi1> to vector<1x24x1xi1>
    %70 = vector.broadcast %69 : vector<1x24x1xi1> to vector<2x24x256xi1>
    %71 = vector.broadcast %cst_23 : f32 to vector<2x24x256xf32>
    %72 = arith.select %70, %59, %71 : vector<2x24x256xi1>, vector<2x24x256xf32>
    %73 = arith.truncf %72 : vector<2x24x256xf32> to vector<2x24x256xbf16>
    %74 = vector.extract_strided_slice %73 {offsets = [0, 0, 0], sizes = [2, 16, 256], strides = [1, 1, 1]} : vector<2x24x256xbf16> to vector<2x16x256xbf16>
    %75 = vector.extract_strided_slice %73 {offsets = [0, 1, 0], sizes = [2, 16, 256], strides = [1, 1, 1]} : vector<2x24x256xbf16> to vector<2x16x256xbf16>
    %76 = vector.extract_strided_slice %73 {offsets = [0, 2, 0], sizes = [2, 16, 256], strides = [1, 1, 1]} : vector<2x24x256xbf16> to vector<2x16x256xbf16>
    %77 = tpu.concatenate %74, %75, %76 in 2 : vector<2x16x256xbf16>, vector<2x16x256xbf16>, vector<2x16x256xbf16> -> vector<2x16x768xbf16>
    %78 = vector.shape_cast %77 : vector<2x16x768xbf16> to vector<32x768xbf16>
    %c0_24 = arith.constant 0 : index
    %c0_25 = arith.constant 0 : index
    %79 = vector.load %arg9[%c0_24, %c0_25] : memref<768x128xbf16, #tpu.memory_space<vmem>>, vector<768x128xbf16>
    %cst_26 = arith.constant dense<0.000000e+00> : vector<32x128xf32>
    %80 = tpu.matmul %78, %79, %cst_26 {dimension_numbers = #tpu.dot_dimension_numbers<[1], [0], [0], [1], [0, 0, 1, 1], [], []>} : vector<32x768xbf16>, vector<768x128xbf16>, vector<32x128xf32> -> vector<32x128xf32>
    %c0_27 = arith.constant 0 : index
    %c0_28 = arith.constant 0 : index
    %81 = vector.load %arg10[%c0_27, %c0_28] : memref<1x128xf32, #tpu.memory_space<vmem>>, vector<1x128xf32>
    %82 = vector.broadcast %81 : vector<1x128xf32> to vector<32x128xf32>
    %83 = arith.mulf %80, %82 : vector<32x128xf32>
    %c0_29 = arith.constant 0 : index
    %c0_30 = arith.constant 0 : index
    %84 = vector.load %arg11[%c0_29, %c0_30] : memref<1x128xf32, #tpu.memory_space<vmem>>, vector<1x128xf32>
    %85 = vector.broadcast %84 : vector<1x128xf32> to vector<32x128xf32>
    %86 = arith.addf %83, %85 : vector<32x128xf32>
    %cst_31 = arith.constant 0.000000e+00 : f32
    %87 = vector.broadcast %cst_31 : f32 to vector<32x128xf32>
    %88 = arith.maximumf %86, %87 : vector<32x128xf32>
    %89 = vector.shape_cast %88 : vector<32x128xf32> to vector<2x16x128xf32>
    %90 = tpu.iota {dimensions = array<i32: 1>} : vector<1x16x1xi32>
    %91 = vector.broadcast %0 : i32 to vector<1x16x1xi32>
    %92 = arith.addi %91, %90 : vector<1x16x1xi32>
    %c16_i32_32 = arith.constant 16 : i32
    %93 = vector.broadcast %c16_i32_32 : i32 to vector<1x16x1xi32>
    %94 = arith.cmpi slt, %92, %93 : vector<1x16x1xi32>
    %cst_33 = arith.constant 0.000000e+00 : f32
    %95 = vector.shape_cast %94 : vector<1x16x1xi1> to vector<1x16x1xi1>
    %96 = vector.broadcast %95 : vector<1x16x1xi1> to vector<2x16x128xi1>
    %97 = vector.broadcast %cst_33 : f32 to vector<2x16x128xf32>
    %98 = arith.select %96, %89, %97 : vector<2x16x128xi1>, vector<2x16x128xf32>
    %c0_34 = arith.constant 0 : index
    %c0_35 = arith.constant 0 : index
    %99 = vector.load %arg15[%c0_34, %c0_35] : memref<2x128xf32, #tpu.memory_space<vmem>>, vector<2x128xf32>
    %cst_36 = arith.constant dense<0.000000e+00> : vector<2x128xf32>
    %100 = vector.multi_reduction <add>, %98, %cst_36 [1] : vector<2x16x128xf32> to vector<2x128xf32>
    %101 = arith.addf %99, %100 : vector<2x128xf32>
    %c0_37 = arith.constant 0 : index
    %c0_38 = arith.constant 0 : index
    %102 = vector.load %arg15[%c0_37, %c0_38] : memref<2x128xf32, #tpu.memory_space<vmem>>, vector<2x128xf32>
    tpu.vector_store %arg15[%c0_37, %c0_38], %101 {strides = array<i32>} : memref<2x128xf32, #tpu.memory_space<vmem>>, vector<2x128xf32>,
    %c0_i32_39 = arith.constant 0 : i32
    %103 = arith.cmpi eq, %arg1, %c0_i32_39 : i32
    %104 = arith.extui %103 : i1 to i32
    %c0_i32_40 = arith.constant 0 : i32
    %105 = arith.cmpi ne, %104, %c0_i32_40 : i32
    scf.if %105 {
      %c0_41 = arith.constant 0 : index
      %c0_42 = arith.constant 0 : index
      %106 = vector.load %arg15[%c0_41, %c0_42] : memref<2x128xf32, #tpu.memory_space<vmem>>, vector<2x128xf32>
      %cst_43 = arith.constant 6.250000e-02 : f32
      %107 = vector.broadcast %cst_43 : f32 to vector<2x128xf32>
      %108 = arith.mulf %106, %107 : vector<2x128xf32>
      %109 = arith.truncf %108 : vector<2x128xf32> to vector<2x128xbf16>
      %c0_44 = arith.constant 0 : index
      %c0_45 = arith.constant 0 : index
      %110 = vector.load %arg12[%c0_44, %c0_45] : memref<128x6xbf16, #tpu.memory_space<vmem>>, vector<128x6xbf16>
      %cst_46 = arith.constant dense<0.000000e+00> : vector<2x6xf32>
      %111 = tpu.matmul %109, %110, %cst_46 {dimension_numbers = #tpu.dot_dimension_numbers<[1], [0], [0], [1], [0, 0, 1, 1], [], []>} : vector<2x128xbf16>, vector<128x6xbf16>, vector<2x6xf32> -> vector<2x6xf32>
      %c0_47 = arith.constant 0 : index
      %c0_48 = arith.constant 0 : index
      %112 = vector.load %arg13[%c0_47, %c0_48] : memref<1x6xf32, #tpu.memory_space<vmem>>, vector<1x6xf32>
      %113 = vector.broadcast %112 : vector<1x6xf32> to vector<2x6xf32>
      %114 = arith.addf %111, %113 : vector<2x6xf32>
      %c0_49 = arith.constant 0 : index
      %c0_50 = arith.constant 0 : index
      %c0_51 = arith.constant 0 : index
      %115 = vector.load %arg14[%c0_49, %c0_50, %c0_51] : memref<1x2x6xf32, #tpu.memory_space<vmem>>, vector<1x2x6xf32>
      %116 = vector.shape_cast %115 : vector<1x2x6xf32> to vector<2x6xf32>
      %117 = vector.shape_cast %114 : vector<2x6xf32> to vector<1x2x6xf32>
      tpu.vector_store %arg14[%c0_49, %c0_50, %c0_51], %117 {strides = array<i32>} : memref<1x2x6xf32, #tpu.memory_space<vmem>>, vector<1x2x6xf32>,
    } else {
    }
    return
  }
  func.func @transform_0(%arg0: i32, %arg1: i32) -> (i32, i32, i32, i32) {
    %c0_i32 = arith.constant 0 : i32
    %c0_i32_0 = arith.constant 0 : i32
    %c0_i32_1 = arith.constant 0 : i32
    %c0_i32_2 = arith.constant 0 : i32
    return %arg0, %c0_i32, %c0_i32_0, %c0_i32_1 : i32, i32, i32, i32
  }
  func.func @transform_1(%arg0: i32, %arg1: i32) -> (i32, i32) {
    %c0_i32 = arith.constant 0 : i32
    %c0_i32_0 = arith.constant 0 : i32
    %c0_i32_1 = arith.constant 0 : i32
    return %c0_i32, %c0_i32_0 : i32, i32
  }
  func.func @transform_2(%arg0: i32, %arg1: i32) -> (i32, i32) {
    %c0_i32 = arith.constant 0 : i32
    %c0_i32_0 = arith.constant 0 : i32
    %c0_i32_1 = arith.constant 0 : i32
    return %c0_i32, %c0_i32_0 : i32, i32
  }
  func.func @transform_3(%arg0: i32, %arg1: i32) -> (i32, i32) {
    %c0_i32 = arith.constant 0 : i32
    %c0_i32_0 = arith.constant 0 : i32
    %c0_i32_1 = arith.constant 0 : i32
    return %c0_i32, %c0_i32_0 : i32, i32
  }
  func.func @transform_4(%arg0: i32, %arg1: i32) -> (i32, i32) {
    %c0_i32 = arith.constant 0 : i32
    %c0_i32_0 = arith.constant 0 : i32
    %c0_i32_1 = arith.constant 0 : i32
    return %c0_i32, %c0_i32_0 : i32, i32
  }
  func.func @transform_5(%arg0: i32, %arg1: i32) -> (i32, i32) {
    %c0_i32 = arith.constant 0 : i32
    %c0_i32_0 = arith.constant 0 : i32
    %c0_i32_1 = arith.constant 0 : i32
    return %c0_i32, %c0_i32_0 : i32, i32
  }
  func.func @transform_6(%arg0: i32, %arg1: i32) -> (i32, i32) {
    %c0_i32 = arith.constant 0 : i32
    %c0_i32_0 = arith.constant 0 : i32
    %c0_i32_1 = arith.constant 0 : i32
    return %c0_i32, %c0_i32_0 : i32, i32
  }
  func.func @transform_7(%arg0: i32, %arg1: i32) -> (i32, i32) {
    %c0_i32 = arith.constant 0 : i32
    %c0_i32_0 = arith.constant 0 : i32
    %c0_i32_1 = arith.constant 0 : i32
    return %c0_i32, %c0_i32_0 : i32, i32
  }
  func.func @transform_8(%arg0: i32, %arg1: i32) -> (i32, i32) {
    %c0_i32 = arith.constant 0 : i32
    %c0_i32_0 = arith.constant 0 : i32
    %c0_i32_1 = arith.constant 0 : i32
    return %c0_i32, %c0_i32_0 : i32, i32
  }
  func.func @transform_9(%arg0: i32, %arg1: i32) -> (i32, i32) {
    %c0_i32 = arith.constant 0 : i32
    %c0_i32_0 = arith.constant 0 : i32
    %c0_i32_1 = arith.constant 0 : i32
    return %c0_i32, %c0_i32_0 : i32, i32
  }
  func.func @transform_10(%arg0: i32, %arg1: i32) -> (i32, i32) {
    %c0_i32 = arith.constant 0 : i32
    %c0_i32_0 = arith.constant 0 : i32
    %c0_i32_1 = arith.constant 0 : i32
    return %c0_i32, %c0_i32_0 : i32, i32
  }
  func.func @transform_11(%arg0: i32, %arg1: i32) -> (i32, i32) {
    %c0_i32 = arith.constant 0 : i32
    %c0_i32_0 = arith.constant 0 : i32
    %c0_i32_1 = arith.constant 0 : i32
    return %c0_i32, %c0_i32_0 : i32, i32
  }
  func.func @transform_12(%arg0: i32, %arg1: i32) -> (i32, i32, i32) {
    %c0_i32 = arith.constant 0 : i32
    %c0_i32_0 = arith.constant 0 : i32
    %c0_i32_1 = arith.constant 0 : i32
    return %arg0, %c0_i32, %c0_i32_0 : i32, i32, i32
  }
}

</mosaic_0001>

<bundles_post_ra>
// kernel: tpu_custom_call.1
= control target key start
LH: loop header
LB: loop body
LE: loop exit
PB: predicated region body
PF: predicated region fallthrough
CT: control target
= control target key end

     0   :  { %17 = vsyncpa [#allocation4], 0  ;;  %s3308_s0 = inlined_call_operand.vmem [shape: bf16[1,2,40,4], index: 0, kind: input, shape index: {}]   ;;  %s3309_s1 = inlined_call_operand.vmem [shape: bf16[28,128], index: 1, kind: input, shape index: {}]   ;;  %s3310_s2 = inlined_call_operand.vmem [shape: f32[1,128], index: 2, kind: input, shape index: {}]   ;;  %s3311_s3 = inlined_call_operand.vmem [shape: f32[1,128], index: 3, kind: input, shape index: {}]   ;;  %s3312_s4 = inlined_call_operand.hbm [shape: bf16[640,256], index: 4, kind: input, shape index: {}]   ;;  %s3313_s5 = inlined_call_operand.vmem [shape: f32[1,256], index: 5, kind: input, shape index: {}]   ;;  %s3314_s6 = inlined_call_operand.vmem [shape: f32[1,256], index: 6, kind: input, shape index: {}]   ;;  %s3315_s7 = inlined_call_operand.hbm [shape: bf16[768,128], index: 7, kind: input, shape index: {}]   ;;  %s3316_s8 = inlined_call_operand.vmem [shape: f32[1,128], index: 8, kind: input, shape index: {}]   ;;  %s3317_s9 = inlined_call_operand.vmem [shape: f32[1,128], index: 9, kind: input, shape index: {}]   ;;  %s3318_s10 = inlined_call_operand.vmem [shape: bf16[128,6], index: 10, kind: input, shape index: {}]   ;;  %s3319_s11 = inlined_call_operand.vmem [shape: f32[1,6], index: 11, kind: input, shape index: {}]   ;;  %s3320_s12 = inlined_call_operand.hbm [shape: f32[1,2,6], index: 12, kind: output, shape index: {}]  }
   0x1   :  { %18 = vsyncpa [#allocation7], 0 }
   0x2   :  { %19 = vsyncpa [#allocation5], 0  ;;  %s2785_s21 = smov [#allocation3]  }
   0x3   :  { %s33_s22 = sshll.u32 %s2785_s21, 4  ;;  %s34_s22 = int_to_ptr.vmem [resolvable:$true] %s33_s22 }
   0x4   :  { %s2727_s23 = scalar_lea.vmem %s34_s22, 10240  ;;  %p2732_p1 = scmp.lt.s32.totalorder %s34_s22, %s34_s22 }
   0x5   :  { %p2728_p0 = scmp.ne.s32.totalorder %s34_s22, %s2727_s23  ;;  %p2733_p2 = scmp.lt.s32.totalorder %s2727_s23, %s2727_s23 }
   0x7   :  { %p2734_p3 = por %p2733_p2, %p2732_p1 }
   0x9   :  { %p2735_p4 = pnand %p2734_p3, %p2728_p0 }
   0xb   :  { %2738 = shalt.err (!%p2735_p4)
}
   0xc   :  { %s2786_s24 = smov 128   ;;  %s2787_s25 = smov 8  }
   0xd   :  { %39 = dma.hbm_to_vmem [thread:$0]  %s3312_s4, 10240, %s34_s22, [#allocation4], %s2786_s24, %s2786_s24, %s2787_s25  }
   0xe   :  { %s2788_s28 = smov [#allocation6]  }
   0xf   :  { %s49_s29 = sshll.u32 %s2788_s28, 4  ;;  %s50_s29 = int_to_ptr.vmem [resolvable:$true] %s49_s29 }
  0x10   :  { %s2747_s30 = scalar_lea.vmem %s50_s29, 6144  ;;  %p2752_p6 = scmp.lt.s32.totalorder %s50_s29, %s50_s29 }
  0x11   :  { %p2748_p5 = scmp.ne.s32.totalorder %s50_s29, %s2747_s30  ;;  %p2753_p7 = scmp.lt.s32.totalorder %s2747_s30, %s2747_s30 }
  0x13   :  { %p2754_p8 = por %p2753_p7, %p2752_p6 }
  0x15   :  { %p2755_p9 = pnand %p2754_p8, %p2748_p5 }
  0x17   :  { %2758 = shalt.err (!%p2755_p9)
}
  0x18   :  { %s2789_s13 = smov 64   ;;  %s2790_s14 = smov 4  }
  0x19   :  { %55 = dma.hbm_to_vmem [thread:$0]  %s3315_s7, 6144, %s50_s29, [#allocation7], %s2789_s13, %s2789_s13, %s2790_s14  }
  0x1a   :  { %2779 = dma.done.wait [#allocation4], 10240  }
  0x1b   :  { %2780 = vsyncadd [#allocation4], 4294957056 }
  0x1c   :  { %2781 = dma.done.wait [#allocation7], 6144  }
  0x1d   :  { %2782 = vsyncadd [#allocation7], 4294961152  ;;  %vm220_vm0 = vcmask 1045504   ;;  %vm166_vm1 = vcmask 1046528   ;;  %v2876_v0 = vld [vmem:[%s3308_s0] sm:$0xff]   ;;  %v2881_v1 = vld [vmem:[%s3308_s0 + $0x8] sm:$0xff]  }
  0x1e   :  { %vm117_vm2 = vsmask.f32 7424  ;;  %v2886_v2 = vld [vmem:[%s3308_s0 + $0x10] ss:$0 sps:$4 sm:$0xff]   ;;  %v221_v3 = vrot.slane %v2876_v0, 2  ;;  %v222_v4 = vrot.slane %v2881_v1, 2 }
  0x1f   :  { %v167_v5 = vrot.slane %v2876_v0, 1  ;;  %v168_v6 = vrot.slane %v2881_v1, 1  ;;  %v170_v7 = vrot.slane %v2886_v2, 1  ;;  %v119_v8 = vshrl.u32 %v2876_v0, 16  ;;  %s2791_s7 = smov 16   ;;  %v2916_v34 = vld [vmem:[%s3308_s0 + $0x1c] sm:$0xff]  }
  0x20   :  { %v121_v9 = vshll.u32 %v2876_v0, 16  ;;  %v126_v10 = vshll.u32 %v2881_v1, 16  ;;  %vm185_vm3 = vsmask.f32 6400  ;;  %v223_v11 = vsel %vm220_vm0, %v221_v3, %v222_v4  ;;  %v2908_v29 = vld [vmem:[%s3309_s1 + $0x8] sm:$0x3f]  }
  0x21   :  { %v169_v12 = vsel %vm166_vm1, %v167_v5, %v168_v6  ;;  %v224_v13 = vrot.slane %v2886_v2, 2  ;;  %v130_v14 = vshrl.u32 %v2881_v1, 16  ;;  %231 = vrot.lane.b32.xlu0 %v223_v11, %s2791_s7  ;;  %v134_v17 = vshll.u32 %v2886_v2, 16  ;;  %v2922_v39 = vld [vmem:[%s3308_s0 + $0x14] sm:$0xff]   ;;  %2519 = vmatprep.subr.msk.bf16.mxu0 %vm220_vm0, %v2908_v29  ;;  %v2930_v44 = vld [vmem:[%s3308_s0 + $0x24] ss:$0 sps:$4 sm:$0xff]  }
  0x22   :  { %177 = vrot.lane.b32.xlu1 %v169_v12, %s2787_s25  ;;  %v123_v15 = vrot.slane %v121_v9, 1  ;;  %v128_v16 = vrot.slane %v126_v10, 1  ;;  %v171_v18 = vsel %vm166_vm1, %v168_v6, %v170_v7  ;;  %v190_v20 = vrot.slane %v126_v10, 2  ;;  %s2792_s0 = smov 12   ;;  %s2793_s13 = smov 20  }
  0x23   :  { %v189_v19 = vrot.slane %v130_v14, 1  ;;  %v193_v21 = vshrl.u32 %v2886_v2, 16  ;;  %v136_v24 = vrot.slane %v134_v17, 1  ;;  %v196_v25 = vrot.slane %v134_v17, 2  ;;  %s2794_s4 = smov 24  }
  0x24   :  { %v124_v22 = vor.u32 %v123_v15, %v119_v8  ;;  %v132_v23 = vor.u32 %v130_v14, %v128_v16  ;;  %v186_v27 = vrot.slane %v119_v8, 1  ;;  %v187_v28 = vrot.slane %v121_v9, 2 }
  0x25   :  { %v195_v26 = vrot.slane %v193_v21, 1  ;;  %v225_v31 = vsel %vm220_vm0, %v222_v4, %v224_v13  ;;  %v191_v32 = vor.u32 %v190_v20, %v189_v19  ;;  %v243_v33 = vrot.slane %v130_v14, 2  ;;  %v2542_v4 = vld [vmem:[%s3309_s1] sm:$0xff]  }
  0x26   :  { %179 = vrot.lane.b32.xlu1 %v171_v18, %s2787_s25  ;;  %v129_v30 = vsel %vm117_vm2, %v124_v22, %v128_v16  ;;  %v244_v36 = vrot.slane %v126_v10, 3  ;;  %v247_v37 = vrot.slane %v193_v21, 2  ;;  %v248_v38 = vrot.slane %v134_v17, 3 }
  0x27   :  { %158 = vrot.lane.b32.xlu0 %v129_v30, %s2790_s14  ;;  %v197_v35 = vor.u32 %v196_v25, %v195_v26  ;;  %v137_v40 = vsel %vm117_vm2, %v132_v23, %v136_v24  ;;  %v188_v41 = vor.u32 %v187_v28, %v186_v27  ;;  %v240_v42 = vrot.slane %v119_v8, 2 }
  0x28   :  { %v241_v43 = vrot.slane %v121_v9, 3  ;;  %v245_v46 = vor.u32 %v244_v36, %v243_v33  ;;  %v249_v47 = vor.u32 %v248_v38, %v247_v37  ;;  %v2936_v48 = vshll.u32 %v2916_v34, 16 }
  0x29   :  { %v198_v45 = vsel %vm185_vm3, %v191_v32, %v197_v35  ;;  %v192_v49 = vsel %vm185_vm3, %v188_v41, %v191_v32  ;;  %vm239_vm4 = vsmask.f32 5376  ;;  %v2940_v51 = vshll.u32 %v2922_v39, 16 }
  0x2a   :  { %233 = vrot.lane.b32.xlu1 %v225_v31, %s2791_s7  ;;  %v242_v50 = vor.u32 %v241_v43, %v240_v42  ;;  %vm270_vm5 = vcmask 1044480   ;;  %v272_v52 = vrot.slane %v2881_v1, 3  ;;  %v274_v53 = vrot.slane %v2886_v2, 3  ;;  %v2543_v42 = vld [vmem:[#allocation3 + $0x74] ss:$8 sps:$4 sm:$0xff]  }
  0x2b   :  { %160 = vrot.lane.b32.xlu0 %v137_v40, %s2790_s14  ;;  %v250_v54 = vsel %vm239_vm4, %v245_v46, %v249_v47  ;;  %v148_v55 = vrot.slane %v2936_v48, 1  ;;  %v150_v56 = vshrl.u32 %v2916_v34, 16  ;;  %v154_v57 = vshll.u32 %v2930_v44, 16  ;;  %v2547_v43 = vld [vmem:[#allocation3 + $0x174] ss:$8 sps:$4 sm:$0xff]   ;;  %1117 = vmatprep.subr.bf16.mxu1 %v2543_v42 }
  0x2c   :  { %v246_v58 = vsel %vm239_vm4, %v242_v50, %v245_v46  ;;  %v271_v59 = vrot.slane %v2876_v0, 3  ;;  %v139_v60 = vshrl.u32 %v2922_v39, 16  ;;  %v143_v61 = vrot.slane %v2940_v51, 1  ;;  %v2549_v46 = vld [vmem:[#allocation3 + $0x64] ss:$8 sps:$4 sm:$0xff]  }
  0x2d   :  { %v275_v62 = vsel %vm270_vm5, %v272_v52, %v274_v53  ;;  %v152_v63 = vor.u32 %v150_v56, %v148_v55  ;;  %v156_v2 = vrot.slane %v154_v57, 1  ;;  %v206_v3 = vshrl.u32 %v2930_v44, 16  ;;  %v2555_v53 = vld [vmem:[#allocation3 + $0x54] ss:$8 sps:$4 sm:$0xff]   ;;  %v2557_v42 = vld [vmem:[#allocation3 + $0x150] ss:$8 sps:$4 sm:$0xff]  }
  0x2e   :  { %214 = vrot.lane.b32.xlu1 %v198_v45, %s2792_s0  ;;  %v273_v5 = vsel %vm270_vm5, %v271_v59, %v272_v52  ;;  %v144_v6 = vor.u32 %v143_v61, %v139_v60  ;;  %v173_v7 = vrot.slane %v2916_v34, 1  ;;  %v175_v8 = vrot.slane %v2930_v44, 1  ;;  %v2548_v45 = vld [vmem:[#allocation3 + $0x70] ss:$8 sps:$4 sm:$0xff]   ;;  %v2554_v52 = vld [vmem:[#allocation3 + $0x60] ss:$8 sps:$4 sm:$0xff]  }
  0x2f   :  { %212 = vrot.lane.b32.xlu0 %v192_v49, %s2792_s0  ;;  %v202_v9 = vrot.slane %v150_v56, 1  ;;  %v203_v10 = vrot.slane %v2936_v48, 2  ;;  %v157_v11 = vsel %vm117_vm2, %v152_v63, %v156_v2  ;;  %v208_v12 = vrot.slane %v206_v3, 1  ;;  %1118 = vmatpush1.bf16.msra.mxu1 %v2548_v45  ;;  %v2572_v59 = vld [vmem:[#allocation3 + $0x30] ss:$8 sps:$4 sm:$0xff]  }
  0x30   :  { %v209_v13 = vrot.slane %v154_v57, 2  ;;  %v369_v14 = vsel %vm220_vm0, %v2908_v29, 0  ;;  %v149_v15 = vsel %vm117_vm2, %v144_v6, %v148_v55  ;;  %v172_v16 = vrot.slane %v2922_v39, 1  ;;  %1119 = vmatprep.subr.bf16.mxu1 %v2549_v46  ;;  %v2579_v63 = vld [vmem:[#allocation3 + $0x14] ss:$8 sps:$4 sm:$0xff]  }
  0x31   :  { %v199_v17 = vrot.slane %v139_v60, 1  ;;  %v200_v18 = vrot.slane %v2940_v51, 2  ;;  %2488 = vmatpush3.bf16.msra.mxu0 %v369_v14  ;;  %v176_v19 = vsel %vm166_vm1, %v173_v7, %v175_v8  ;;  %v204_v20 = vor.u32 %v203_v10, %v202_v9  ;;  %v2584_v2 = vld [vmem:[#allocation3 + $0x10] ss:$8 sps:$4 sm:$0xff]   ;;  %v2602_v8 = vld [vmem:[#allocation3 + $0xe0] ss:$8 sps:$4 sm:$0xff]  }
  0x32   :  { %264 = vrot.lane.b32.xlu1 %v250_v54, %s2793_s13  ;;  %2489 = vmatprep.subr.bf16.mxu0 %v2542_v4  ;;  %v210_v21 = vor.u32 %v209_v13, %v208_v12  ;;  %v174_v22 = vsel %vm166_vm1, %v172_v16, %v173_v7  ;;  %v227_v24 = vrot.slane %v2916_v34, 2  ;;  %v229_v25 = vrot.slane %v2930_v44, 2  ;;  %v2596_v6 = vld [vmem:[#allocation3 + $0xf0] ss:$8 sps:$4 sm:$0xff]   ;;  %v2597_v7 = vld [vmem:[#allocation3 + $0xe4] ss:$8 sps:$4 sm:$0xff]  }
  0x33   :  { %262 = vrot.lane.b32.xlu0 %v246_v58, %s2793_s13  ;;  %v201_v23 = vor.u32 %v200_v18, %v199_v17  ;;  %v254_v26 = vrot.slane %v150_v56, 2  ;;  %v255_v28 = vrot.slane %v2936_v48, 3  ;;  %v258_v29 = vrot.slane %v206_v3, 2  ;;  %1120 = vmatpush1.bf16.msra.mxu1 %v2554_v52  ;;  %v2560_v56 = vld [vmem:[#allocation3 + $0x50] ss:$8 sps:$4 sm:$0xff]  }
  0x34   :  { %v211_v27 = vsel %vm185_vm3, %v204_v20, %v210_v21  ;;  %v259_v30 = vrot.slane %v154_v57, 3  ;;  %v226_v32 = vrot.slane %v2922_v39, 2  ;;  %v251_v33 = vrot.slane %v139_v60, 2  ;;  %1121 = vmatprep.subr.bf16.mxu1 %v2555_v53  ;;  %v2566_v57 = vld [vmem:[#allocation3 + $0x40] ss:$8 sps:$4 sm:$0xff]  }
  0x35   :  { %2490 = vmatpush3.bf16.msra.mxu0 %v2542_v4  ;;  %v205_v31 = vsel %vm185_vm3, %v201_v23, %v204_v20  ;;  %v252_v35 = vrot.slane %v2940_v51, 3  ;;  %v230_v36 = vsel %vm220_vm0, %v227_v24, %v229_v25  ;;  %v256_v37 = vor.u32 %v255_v28, %v254_v26  ;;  %v2567_v58 = vld [vmem:[#allocation3 + $0x34] ss:$8 sps:$4 sm:$0xff]   ;;  %v2573_v60 = vld [vmem:[#allocation3 + $0x24] ss:$8 sps:$4 sm:$0xff]  }
  0x36   :  { %283 = vrot.lane.b32.xlu1 %v275_v62, %s2794_s4  ;;  %v260_v38 = vor.u32 %v259_v30, %v258_v29  ;;  %v228_v40 = vsel %vm220_vm0, %v226_v32, %v227_v24  ;;  %v277_v48 = vrot.slane %v2916_v34, 3  ;;  %v279_v49 = vrot.slane %v2930_v44, 3  ;;  %1180 = vmatprep.subr.bf16.mxu0 %v2547_v43  ;;  %v2561_v44 = vld [vmem:[#allocation3 + $0x44] ss:$8 sps:$4 sm:$0xff]   ;;  %v2578_v62 = vld [vmem:[#allocation3 + $0x20] ss:$8 sps:$4 sm:$0xff]  }
  0x37   :  { %281 = vrot.lane.b32.xlu0 %v273_v5, %s2794_s4  ;;  %v253_v41 = vor.u32 %v252_v35, %v251_v33  ;;  %v276_v51 = vrot.slane %v2922_v39, 3  ;;  %1122 = vmatpush1.bf16.msra.mxu1 %v2560_v56  ;;  %v2795_v61 = vmov 0.0   ;;  %v2585_v3 = vld [vmem:[#allocation3 + $0x4] ss:$8 sps:$4 sm:$0xff]   ;;  %v2590_v4 = vld [vmem:[#allocation3] ss:$8 sps:$4 sm:$0xff]  }
  0x38   :  { %v261_v47 = vsel %vm239_vm4, %v256_v37, %v260_v38  ;;  %v280_v54 = vsel %vm270_vm5, %v277_v48, %v279_v49  ;;  %1123 = vmatprep.subr.bf16.mxu1 %v2561_v44  ;;  %76 = vst [vmem:[#allocation2] sm:$0x3] %v2795_v61  ;;  %v2591_v5 = vld [vmem:[#allocation3 + $0xf4] ss:$8 sps:$4 sm:$0xff]   ;;  %vm289_vm6 = vcmask 31744   ;;  %vm298_vm7 = vcmask 64512  }
  0x39   :  { %v257_v50 = vsel %vm239_vm4, %v253_v41, %v256_v37  ;;  %v278_v55 = vsel %vm270_vm5, %v276_v51, %v277_v48  ;;  %v2603_v9 = vld [vmem:[#allocation3 + $0xd4] ss:$8 sps:$4 sm:$0xff]   ;;  %vm307_vm8 = vcmask 97280   ;;  %vm316_vm9 = vcmask 130048   ;;  %v2553_v33 = vld [vmem:[#allocation3 + $0x164] ss:$8 sps:$4 sm:$0xff]  }
  0x3a   :  { %164 = vrot.lane.b32.xlu1 %v157_v11, %s2790_s14  ;;  %vm325_vm10 = vcmask 162816   ;;  %vm334_vm11 = vcmask 195584   ;;  %vm358_vm12 = vcmask 228352   ;;  %v2551_v37 = vld [vmem:[#allocation3 + $0x160] ss:$8 sps:$4 sm:$0xff]   ;;  %vm2796_vm15 = vmmov 1  }
  0x3b   :  { %162 = vrot.lane.b32.xlu0 %v149_v15, %s2790_s14  ;;  %1124 = vmatpush1.bf16.msra.mxu1 %v2566_v57  ;;  %v2559_v38 = vld [vmem:[#allocation3 + $0x154] ss:$8 sps:$4 sm:$0xff]   ;;  %v2565_v43 = vld [vmem:[#allocation3 + $0x144] ss:$8 sps:$4 sm:$0xff]   ;;  %v2569_v51 = vld [vmem:[#allocation3 + $0x130] ss:$8 sps:$4 sm:$0xff]  }
  0x3c   :  { %1125 = vmatprep.subr.bf16.mxu1 %v2567_v58  ;;  %v2571_v48 = vld [vmem:[#allocation3 + $0x134] ss:$8 sps:$4 sm:$0xff]   ;;  %v2577_v52 = vld [vmem:[#allocation3 + $0x124] ss:$8 sps:$4 sm:$0xff]   ;;  %v2575_v57 = vld [vmem:[#allocation3 + $0x120] ss:$8 sps:$4 sm:$0xff]  }
  0x3e   :  { %183 = vrot.lane.b32.xlu1 %v176_v19, %s2787_s25 }
  0x3f   :  { %181 = vrot.lane.b32.xlu0 %v174_v22, %s2787_s25  ;;  %1126 = vmatpush1.bf16.msra.mxu1 %v2572_v59  ;;  %s2799_s25 = smov [#allocation8]  }
  0x40   :  { %1127 = vmatprep.subr.bf16.mxu1 %v2573_v60  ;;  %v2583_v60 = vld [vmem:[#allocation3 + $0x114] ss:$8 sps:$4 sm:$0xff]   ;;  %s2199_s14 = sshll.u32 %s2799_s25, 4  ;;  %s2200_s14 = int_to_ptr.vmem [resolvable:$true] %s2199_s14 }
  0x41   :  { %s2759_s17 = scalar_lea.vmem %s2200_s14, 32  ;;  %p2764_p11 = scmp.lt.s32.totalorder %s2200_s14, %s2200_s14 }
  0x42   :  { %218 = vrot.lane.b32.xlu1 %v211_v27, %s2792_s0  ;;  %p2760_p10 = scmp.ne.s32.totalorder %s2200_s14, %s2759_s17  ;;  %p2765_p12 = scmp.lt.s32.totalorder %s2759_s17, %s2759_s17 }
  0x43   :  { %216 = vrot.lane.b32.xlu0 %v205_v31, %s2792_s0  ;;  %1128 = vmatpush1.bf16.msra.mxu1 %v2578_v62  ;;  %v2545_v31 = vld [vmem:[#allocation3 + $0x170] ss:$8 sps:$4 sm:$0xff]  }
  0x44   :  { %1129 = vmatprep.subr.bf16.mxu1 %v2579_v63  ;;  %p2766_p13 = por %p2765_p12, %p2764_p11 }
  0x46   :  { %237 = vrot.lane.b32.xlu1 %v230_v36, %s2791_s7  ;;  %p2767_p0 = pnand %p2766_p13, %p2760_p10 }
  0x47   :  { %235 = vrot.lane.b32.xlu0 %v228_v40, %s2791_s7  ;;  %1130 = vmatpush1.bf16.msra.mxu1 %v2584_v2 }
  0x48   :  { %1131 = vmatprep.subr.bf16.mxu1 %v2585_v3 }
  0x4a   :  { %268 = vrot.lane.b32.xlu1 %v261_v47, %s2793_s13  ;;  %v2563_v47 = vld [vmem:[#allocation3 + $0x140] ss:$8 sps:$4 sm:$0xff]  }
  0x4b   :  { %266 = vrot.lane.b32.xlu0 %v257_v50, %s2793_s13  ;;  %1132 = vmatpush1.bf16.msra.mxu1 %v2590_v4 }
  0x4c   :  { %1133 = vmatprep.subr.bf16.mxu1 %v2591_v5 }
  0x4e   :  { %287 = vrot.lane.b32.xlu1 %v280_v54, %s2794_s4 }
  0x4f   :  { %285 = vrot.lane.b32.xlu0 %v278_v55, %s2794_s4  ;;  %1134 = vmatpush2.bf16.msra.mxu1 %v2596_v6  ;;  %v2581_v6 = vld [vmem:[#allocation3 + $0x110] ss:$8 sps:$4 sm:$0xff]  }
  0x50   :  { %1135 = vmatprep.subr.bf16.mxu1 %v2597_v7 }
  0x53   :  { %1136 = vmatpush2.bf16.msra.mxu1 %v2602_v8  ;;  %v2589_v8 = vld [vmem:[#allocation3 + $0x104] ss:$8 sps:$4 sm:$0xff]  }
  0x54   :  { %1137 = vmatprep.subr.bf16.mxu1 %v2603_v9  ;;  %v2587_v9 = vld [vmem:[#allocation3 + $0x100] ss:$8 sps:$4 sm:$0xff]  }
  0x93   :  { %v232_v10 = vpop.permute.xlu0 %231 }
  0x94   :  { %v178_v11 = vpop.permute.xlu1 %177 }
  0x98   :  { %v180_v12 = vpop.permute.xlu1 %179 }
  0x99   :  { %v159_v13 = vpop.permute.xlu0 %158 }
  0x9a   :  { %v291_v18 = vsel %vm289_vm6, %v2876_v0, %v159_v13  ;;  %v2599_v13 = vld [vmem:[#allocation3 + $0x1e0] ss:$8 sps:$4 sm:$0xff]  }
  0x9b   :  { %v300_v22 = vsel %vm298_vm7, %v291_v18, %v178_v11  ;;  %v2593_v11 = vld [vmem:[#allocation3 + $0x1f0] ss:$8 sps:$4 sm:$0xff]   ;;  %v2613_v18 = vld [vmem:[#allocation3 + $0x1c4] ss:$8 sps:$4 sm:$0xff]  }
  0x9c   :  { %v234_v14 = vpop.permute.xlu1 %233 }
  0x9d   :  { %v161_v15 = vpop.permute.xlu0 %160 }
  0x9e   :  { %v293_v16 = vsel %vm289_vm6, %v2881_v1, %v161_v15  ;;  %v2605_v15 = vld [vmem:[#allocation3 + $0x1d0] ss:$8 sps:$4 sm:$0xff]  }
  0x9f   :  { %v302_v20 = vsel %vm298_vm7, %v293_v16, %v180_v12  ;;  %v2601_v12 = vld [vmem:[#allocation3 + $0x1e4] ss:$8 sps:$4 sm:$0xff]   ;;  %v2608_v16 = vld [vmem:[#allocation3 + $0xd0] ss:$8 sps:$4 sm:$0xff]  }
  0xa0   :  { %v215_v17 = vpop.permute.xlu1 %214  ;;  %1138 = vmatpush2.bf16.msra.mxu1 %v2608_v16 }
  0xa1   :  { %v213_v19 = vpop.permute.xlu0 %212  ;;  %v311_v21 = vsel %vm307_vm8, %v302_v20, %v215_v17  ;;  %v2609_v17 = vld [vmem:[#allocation3 + $0xc4] ss:$8 sps:$4 sm:$0xff]   ;;  %v2614_v20 = vld [vmem:[#allocation3 + $0xc0] ss:$8 sps:$4 sm:$0xff]  }
  0xa2   :  { %v309_v24 = vsel %vm307_vm8, %v300_v22, %v213_v19  ;;  %v320_v1 = vsel %vm316_vm9, %v311_v21, %v234_v14  ;;  %v2607_v14 = vld [vmem:[#allocation3 + $0x1d4] ss:$8 sps:$4 sm:$0xff]   ;;  %v2611_v19 = vld [vmem:[#allocation3 + $0x1c0] ss:$8 sps:$4 sm:$0xff]   ;;  %1139 = vmatprep.subr.bf16.mxu1 %v2609_v17 }
  0xa3   :  { %v318_v26 = vsel %vm316_vm9, %v309_v24, %v232_v10  ;;  %v2595_v10 = vld [vmem:[#allocation3 + $0x1f4] ss:$8 sps:$4 sm:$0xff]   ;;  %v2620_v24 = vld [vmem:[#allocation3 + $0xb0] ss:$8 sps:$4 sm:$0xff]  }
  0xa4   :  { %v265_v23 = vpop.permute.xlu1 %264  ;;  %1140 = vmatpush2.bf16.msra.mxu1 %v2614_v20  ;;  %v2615_v21 = vld [vmem:[#allocation3 + $0xb4] ss:$8 sps:$4 sm:$0xff]  }
  0xa5   :  { %v263_v25 = vpop.permute.xlu0 %262  ;;  %v329_v0 = vsel %vm325_vm10, %v320_v1, %v265_v23  ;;  %v2619_v22 = vld [vmem:[#allocation3 + $0x1b4] ss:$8 sps:$4 sm:$0xff]   ;;  %v2617_v23 = vld [vmem:[#allocation3 + $0x1b0] ss:$8 sps:$4 sm:$0xff]   ;;  %1141 = vmatprep.subr.bf16.mxu1 %v2615_v21  ;;  %v2625_v1 = vld [vmem:[#allocation3 + $0x1a4] ss:$8 sps:$4 sm:$0xff]  }
  0xa6   :  { %v327_v28 = vsel %vm325_vm10, %v318_v26, %v263_v25  ;;  %v2621_v25 = vld [vmem:[#allocation3 + $0xa4] ss:$8 sps:$4 sm:$0xff]   ;;  %v2626_v26 = vld [vmem:[#allocation3 + $0xa0] ss:$8 sps:$4 sm:$0xff]  }
  0xa7   :  { %v2642_v21 = vld [vmem:[#allocation3 + $0x260] ss:$8 sps:$4 sm:$0xff]  }
  0xa8   :  { %v284_v27 = vpop.permute.xlu1 %283  ;;  %1142 = vmatpush2.bf16.msra.mxu1 %v2620_v24 }
  0xa9   :  { %v338_v29 = vsel %vm334_vm11, %v329_v0, %v284_v27  ;;  %v282_v30 = vpop.permute.xlu0 %281  ;;  %v2623_v0 = vld [vmem:[#allocation3 + $0x1a0] ss:$8 sps:$4 sm:$0xff]   ;;  %1143 = vmatprep.subr.bf16.mxu1 %v2621_v25  ;;  %v2627_v27 = vld [vmem:[#allocation3 + $0x94] ss:$8 sps:$4 sm:$0xff]  }
  0xaa   :  { %v336_v32 = vsel %vm334_vm11, %v327_v28, %v282_v30  ;;  %v2629_v28 = vld [vmem:[#allocation3 + $0x190] ss:$8 sps:$4 sm:$0xff]  }
  0xab   :  { %2491 = vmatprep.mubr.msk.bf16.mxu0 %vm358_vm12, %v336_v32  ;;  %v2632_v30 = vld [vmem:[#allocation3 + $0x90] ss:$8 sps:$4 sm:$0xff]   ;;  %v2637_v32 = vld [vmem:[#allocation3 + $0x184] ss:$8 sps:$4 sm:$0xff]  }
  0xac   :  { %2492 = vmatmul.mubr.msk.bf16.vlgmr.msra.gmra.mxu0 %vm358_vm12, %v338_v29  ;;  %v165_v35 = vpop.permute.xlu1 %164  ;;  %1144 = vmatpush2.bf16.msra.mxu1 %v2626_v26  ;;  %v2631_v29 = vld [vmem:[#allocation3 + $0x194] ss:$8 sps:$4 sm:$0xff]   ;;  %v2645_v26 = vld [vmem:[#allocation3 + $0x250] ss:$8 sps:$4 sm:$0xff]  }
  0xad   :  { %v163_v36 = vpop.permute.xlu0 %162  ;;  %1181 = vmatpush1.bf16.msra.mxu0 %v2545_v31  ;;  %v297_v53 = vsel %vm289_vm6, %v2916_v34, %v165_v35  ;;  %v2633_v31 = vld [vmem:[#allocation3 + $0x84] ss:$8 sps:$4 sm:$0xff]   ;;  %1145 = vmatprep.subr.bf16.mxu1 %v2627_v27  ;;  %v2638_v35 = vld [vmem:[#allocation3 + $0x80] ss:$8 sps:$4 sm:$0xff]  }
  0xae   :  { %1182 = vmatprep.subr.bf16.mxu0 %v2553_v33  ;;  %v295_v55 = vsel %vm289_vm6, %v2922_v39, %v163_v36  ;;  %v2635_v33 = vld [vmem:[#allocation3 + $0x180] ss:$8 sps:$4 sm:$0xff]   ;;  %v2641_v36 = vld [vmem:[#allocation3 + $0x274] ss:$8 sps:$4 sm:$0xff]  }
  0xb0   :  { %v184_v40 = vpop.permute.xlu1 %183  ;;  %1146 = vmatpush2.bf16.msra.mxu1 %v2632_v30 }
  0xb1   :  { %v182_v41 = vpop.permute.xlu0 %181  ;;  %1183 = vmatpush1.bf16.msra.mxu0 %v2551_v37  ;;  %v306_v56 = vsel %vm298_vm7, %v297_v53, %v184_v40  ;;  %1147 = vmatprep.subr.bf16.mxu1 %v2633_v31  ;;  %v475_v37 = vlaneseq }
  0xb2   :  { %1184 = vmatprep.subr.bf16.mxu0 %v2559_v38  ;;  %v304_v58 = vsel %vm298_vm7, %v295_v55, %v182_v41  ;;  %v3044_v41 = vld [vmem:[%s3310_s2] ss:$0 sm:$0xff]  ;;  %vm2191_vm7 = vcmask 41984  }
  0xb3   :  { %v3036_v38 = vshrl.u32 %v475_v37, 7 }
  0xb4   :  { %v219_v45 = vpop.permute.xlu1 %218  ;;  %1148 = vmatpush2.bf16.msra.mxu1 %v2638_v35 }
  0xb5   :  { %v217_v46 = vpop.permute.xlu0 %216  ;;  %1185 = vmatpush1.bf16.msra.mxu0 %v2557_v42  ;;  %v315_v59 = vsel %vm307_vm8, %v306_v56, %v219_v45  ;;  %1243 = vmatprep.subr.bf16.mxu1 %v2641_v36  ;;  %v3039_v40 = vadd.s32 16, %v3036_v38  ;;  %v3063_v53 = vadd.s32 4294967293, %v3036_v38  ;;  %v2648_v36 = vld [vmem:[#allocation3 + $0x240] ss:$8 sps:$4 sm:$0xff]  }
  0xb6   :  { %1186 = vmatprep.subr.bf16.mxu0 %v2565_v43  ;;  %v313_v62 = vsel %vm307_vm8, %v304_v58, %v217_v46  ;;  %v3049_v43 = vld [vmem:[%s3311_s3] ss:$0 sm:$0xff] }
  0xb7   :  { %v3052_v45 = vadd.s32 4294967293, %v3039_v40  ;;  %vm485_vm14 = vcmp.ge.s32.totalorder %v3063_v53, 0 }
  0xb8   :  { %v238_v49 = vpop.permute.xlu1 %237  ;;  %vm2310_vm4 = vmpackc.low %vm2796_vm15, %vm485_vm14 }
  0xb9   :  { %v236_v50 = vpop.permute.xlu0 %235  ;;  %1187 = vmatpush1.bf16.msra.mxu0 %v2563_v47  ;;  %v324_v63 = vsel %vm316_vm9, %v315_v59, %v238_v49  ;;  %vm491_vm13 = vcmp.lt.s32.totalorder %v3052_v45, 16 }
  0xba   :  { %1188 = vmatprep.subr.bf16.mxu0 %v2571_v48  ;;  %v322_v34 = vsel %vm316_vm9, %v313_v62, %v236_v50  ;;  %vm2385_vm5 = vmpackc.low %vm485_vm14, %vm491_vm13 }
  0xbc   :  { %v269_v54 = vpop.permute.xlu1 %268 }
  0xbd   :  { %v267_v44 = vpop.permute.xlu0 %266  ;;  %1189 = vmatpush1.bf16.msra.mxu0 %v2569_v51  ;;  %v333_v2 = vsel %vm325_vm10, %v324_v63, %v269_v54 }
  0xbe   :  { %1190 = vmatprep.subr.bf16.mxu0 %v2577_v52  ;;  %v331_v3 = vsel %vm325_vm10, %v322_v34, %v267_v44 }
  0xc0   :  { %v288_v39 = vpop.permute.xlu1 %287 }
  0xc1   :  { %v342_v4 = vsel %vm334_vm11, %v333_v2, %v288_v39  ;;  %v286_v5 = vpop.permute.xlu0 %285  ;;  %1191 = vmatpush1.bf16.msra.mxu0 %v2575_v57 }
  0xc2   :  { %v340_v7 = vsel %vm334_vm11, %v331_v3, %v286_v5  ;;  %1192 = vmatprep.subr.bf16.mxu0 %v2583_v60 }
  0xc3   :  { %2495 = vmatprep.mubr.msk.bf16.mxu0 %vm358_vm12, %v340_v7 }
  0xc4   :  { %2496 = vmatmul.mubr.msk.bf16.gmra.mxu0 %vm358_vm12, %v342_v4 }
  0xc5   :  { %1193 = vmatpush1.bf16.msra.mxu0 %v2581_v6 }
  0xc6   :  { %1194 = vmatprep.subr.bf16.mxu0 %v2589_v8 }
  0xc9   :  { %1195 = vmatpush1.bf16.msra.mxu0 %v2587_v9 }
  0xca   :  { %1196 = vmatprep.subr.bf16.mxu0 %v2595_v10 }
  0xcd   :  { %1197 = vmatpush2.bf16.msra.mxu0 %v2593_v11 }
  0xce   :  { %1198 = vmatprep.subr.bf16.mxu0 %v2601_v12 }
  0xd1   :  { %1199 = vmatpush2.bf16.msra.mxu0 %v2599_v13 }
  0xd2   :  { %1200 = vmatprep.subr.bf16.mxu0 %v2607_v14  ;;  %v2639_v14 = vld [vmem:[#allocation3 + $0x270] ss:$8 sps:$4 sm:$0xff]  }
  0xd5   :  { %1201 = vmatpush2.bf16.msra.mxu0 %v2605_v15 }
  0xd6   :  { %1202 = vmatprep.subr.bf16.mxu0 %v2613_v18  ;;  %v2644_v18 = vld [vmem:[#allocation3 + $0x264] ss:$8 sps:$4 sm:$0xff]  }
  0xd9   :  { %1203 = vmatpush2.bf16.msra.mxu0 %v2611_v19 }
  0xda   :  { %1204 = vmatprep.subr.bf16.mxu0 %v2619_v22 }
  0xdd   :  { %1205 = vmatpush2.bf16.msra.mxu0 %v2617_v23  ;;  %v2647_v23 = vld [vmem:[#allocation3 + $0x254] ss:$8 sps:$4 sm:$0xff]  }
  0xde   :  { %1206 = vmatprep.subr.bf16.mxu0 %v2625_v1 }
  0xe1   :  { %1207 = vmatpush2.bf16.msra.mxu0 %v2623_v0 }
  0xe2   :  { %1208 = vmatprep.subr.bf16.mxu0 %v2631_v29  ;;  %v2650_v29 = vld [vmem:[#allocation3 + $0x244] ss:$8 sps:$4 sm:$0xff]  }
  0xe5   :  { %1209 = vmatpush2.bf16.msra.mxu0 %v2629_v28 }
  0xe6   :  { %1210 = vmatprep.subr.bf16.mxu0 %v2637_v32 }
  0xe9   :  { %1211 = vmatpush2.bf16.msra.mxu0 %v2635_v33 }
 0x16c   :  { %v2493_v42 = vpop.f32.mrf.mxu0 }
 0x16d   :  { %v445_v46 = vmul.f32 %v2493_v42, %v3044_v41  ;;  %v2653_v42 = vld [vmem:[#allocation3 + $0x234] ss:$8 sps:$4 sm:$0xff]  }
 0x16e   :  { %v405_v47 = vpop.f32.mrf.mxu0 }
 0x16f   :  { %v3056_v48 = vadd.f32 %v3049_v43, %v445_v46  ;;  %v443_v49 = vmul.f32 %v3044_v41, %v405_v47 }
 0x170   :  { %v2494_v50 = vpop.f32.mrf.mxu0 }
 0x171   :  { %v468_v51 = vmax.f32 %v3056_v48, 0.0  ;;  %v458_v52 = vadd.f32 %v3049_v43, %v443_v49 }
 0x172   :  { %v408_v54 = vpop.f32.mrf.mxu0 }
 0x173   :  { %v507_v55 = vsel %vm491_vm13, %v468_v51, 0.0  ;;  %v444_v56 = vmul.f32 %v3044_v41, %v408_v54  ;;  %v466_v57 = vmax.f32 %v458_v52, 0.0  ;;  %v2651_v54 = vld [vmem:[#allocation3 + $0x230] ss:$8 sps:$4 sm:$0xff]  }
 0x174   :  { %v3071_v44 = vpack.c.bf16 %v2795_v61, %v507_v55 }
 0x175   :  { %v459_v58 = vadd.f32 %v3049_v43, %v444_v56  ;;  %v505_v63 = vsel %vm485_vm14, %v466_v57, 0.0 }
 0x176   :  { %v525_v60 = vshll.u32 %v3071_v44, 16  ;;  %v529_v62 = vshrl.u32 %v3071_v44, 16  ;;  %v552_v13 = vrot.slane %v3071_v44, 1 }
 0x177   :  { %v467_v59 = vmax.f32 %v459_v58, 0.0 }
 0x178   :  { %v560_v3 = vrot.slane %v529_v62, 1  ;;  %v561_v4 = vrot.slane %v525_v60, 2  ;;  %v3086_v10 = vrot.slane %v525_v60, 1 }
 0x179   :  { %v3079_v34 = vpack.c.bf16 %v467_v59, %v505_v63  ;;  %v2311_v15 = vpack.c.bf16 %v467_v59, %v466_v57  ;;  %v2656_v57 = vld [vmem:[#allocation3 + $0x224] ss:$8 sps:$4 sm:$0xff]   ;;  %v2654_v63 = vld [vmem:[#allocation3 + $0x220] ss:$8 sps:$4 sm:$0xff]  }
 0x17a   :  { %v3088_v12 = vor.u32 %v561_v4, %v560_v3 }
 0x17b   :  { %v518_v2 = vshrl.u32 %v3079_v34, 16  ;;  %v520_v39 = vshll.u32 %v3079_v34, 16  ;;  %v551_v8 = vrot.slane %v3079_v34, 1 }
 0x17d   :  { %v522_v5 = vrot.slane %v520_v39, 1  ;;  %v557_v6 = vrot.slane %v518_v2, 1  ;;  %v558_v7 = vrot.slane %v520_v39, 2  ;;  %v553_v19 = vsel %vm166_vm1, %v551_v8, %v552_v13 }
 0x17f   :  { %v523_v9 = vor.u32 %v522_v5, %v518_v2  ;;  %v559_v11 = vor.u32 %v558_v7, %v557_v6  ;;  %v2659_v5 = vld [vmem:[#allocation3 + $0x214] ss:$8 sps:$4 sm:$0xff]  }
 0x181   :  { %v528_v16 = vsel %vm117_vm2, %v523_v9, %v3086_v10  ;;  %v563_v17 = vsel %vm185_vm3, %v559_v11, %v3088_v12  ;;  %v531_v9 = vor.u32 %v529_v62, %v3086_v10 }
 0x182   :  { %1149 = vmatprep.mubr.bf16.mxu1 %v528_v16  ;;  %1212 = vmatprep.mubr.bf16.mxu0 %v563_v17 }
 0x183   :  { %2312 = vmatmul.mubr.msk.bf16.vlgmr.msra.gmra.mxu1 %vm2310_vm4, %v2311_v15  ;;  %1213 = vmatmul.mubr.bf16.vlgmr.msra.gmra.mxu0 %v553_v19 }
 0x184   :  { %v2497_v20 = vpop.f32.mrf.mxu0  ;;  %1244 = vmatpush1.bf16.msra.mxu1 %v2639_v14 }
 0x185   :  { %v449_v22 = vmul.f32 %v2497_v20, %v3044_v41  ;;  %1245 = vmatprep.subr.bf16.mxu1 %v2644_v18 }
 0x186   :  { %v421_v24 = vpop.f32.mrf.mxu0 }
 0x187   :  { %v464_v25 = vadd.f32 %v3049_v43, %v449_v22  ;;  %v447_v1 = vmul.f32 %v3044_v41, %v421_v24  ;;  %v2657_v22 = vld [vmem:[#allocation3 + $0x210] ss:$8 sps:$4 sm:$0xff]  }
 0x188   :  { %v2498_v0 = vpop.f32.mrf.mxu0  ;;  %1246 = vmatpush1.bf16.msra.mxu1 %v2642_v21 }
 0x189   :  { %v472_v27 = vmax.f32 %v464_v25, 0.0  ;;  %v462_v28 = vadd.f32 %v3049_v43, %v447_v1  ;;  %1247 = vmatprep.subr.bf16.mxu1 %v2647_v23  ;;  %v2662_v25 = vld [vmem:[#allocation3 + $0x204] ss:$8 sps:$4 sm:$0xff]   ;;  %v2797_v0 = vmov 0  }
 0x18a   :  { %v424_v30 = vpop.f32.mrf.mxu0 }
 0x18b   :  { %v511_v31 = vsel %vm491_vm13, %v472_v27, 0.0  ;;  %v448_v32 = vmul.f32 %v3044_v41, %v424_v30  ;;  %v470_v35 = vmax.f32 %v462_v28, 0.0  ;;  %v572_v27 = vrot.slane %v3071_v44, 2  ;;  %v2665_v44 = vld [vmem:[#allocation6 + $0x70] sm:$0xff]  }
 0x18c   :  { %v3109_v33 = vpack.c.bf16 %v2795_v61, %v511_v31  ;;  %1248 = vmatpush1.bf16.msra.mxu1 %v2645_v26  ;;  %v571_v26 = vrot.slane %v3079_v34, 2  ;;  %v2663_v34 = vld [vmem:[#allocation6 + $0x78] sm:$0xff]  }
 0x18d   :  { %v463_v37 = vadd.f32 %v3049_v43, %v448_v32  ;;  %1249 = vmatprep.subr.bf16.mxu1 %v2650_v29  ;;  %v509_v50 = vsel %vm485_vm14, %v470_v35, 0.0  ;;  %v2386_v10 = vpack.c.bf16 %v470_v35, %v468_v51  ;;  %2394 = vmatprep.subr.bf16.mxu0 %v2663_v34 }
 0x18e   :  { %v540_v46 = vshll.u32 %v3109_v33, 16  ;;  %v544_v47 = vshrl.u32 %v3109_v33, 16  ;;  %v555_v6 = vrot.slane %v3109_v33, 1  ;;  %v602_v48 = vunpack.c.l.b16 %v3109_v33 }
 0x18f   :  { %v471_v49 = vmax.f32 %v463_v37, 0.0  ;;  %v573_v28 = vsel %vm220_vm0, %v571_v26, %v572_v27  ;;  %v575_v30 = vrot.slane %v3109_v33, 2  ;;  %v2669_v33 = vld [vmem:[#allocation6 + $0xf8] sm:$0xff]  }
 0x190   :  { %1250 = vmatpush1.bf16.msra.mxu1 %v2648_v36  ;;  %v567_v41 = vrot.slane %v544_v47, 1  ;;  %v568_v52 = vrot.slane %v540_v46, 2  ;;  %v542_v56 = vrot.slane %v540_v46, 1  ;;  %v604_v51 = vunpack.c.l.b16 %v555_v6  ;;  %v2666_v46 = vld [vmem:[#allocation6 + $0x30] sm:$0xff]   ;;  %v1306_v26 = vld [vmem:[%s3313_s5] sm:$0x3] }
 0x191   :  { %v3116_v55 = vpack.c.bf16 %v471_v49, %v509_v50  ;;  %1251 = vmatprep.subr.bf16.mxu1 %v2653_v42  ;;  %v606_v36 = vunpack.c.l.b16 %v575_v30  ;;  %v2664_v42 = vld [vmem:[#allocation6 + $0x38] sm:$0xff]   ;;  %v2668_v49 = vld [vmem:[#allocation6 + $0x28] sm:$0xff]   ;;  %v2670_v50 = vld [vmem:[#allocation6 + $0x60] sm:$0xff]  }
 0x192   :  { %v569_v59 = vor.u32 %v568_v52, %v567_v41  ;;  %v546_v4 = vor.u32 %v544_v47, %v542_v56  ;;  %2395 = vmatpush3.bf16.msra.mxu0 %v2664_v42  ;;  %v2667_v47 = vld [vmem:[#allocation6 + $0x68] sm:$0xff]   ;;  %v2671_v41 = vld [vmem:[#allocation6 + $0xb8] sm:$0xff]   ;;  %v2672_v52 = vld [vmem:[#allocation6 + $0x20] sm:$0xff]  }
 0x193   :  { %v533_v43 = vshrl.u32 %v3116_v55, 16  ;;  %v535_v58 = vshll.u32 %v3116_v55, 16  ;;  %v554_v60 = vrot.slane %v3116_v55, 1  ;;  %v597_v45 = vunpack.c.h.b16 %v3116_v55  ;;  %2396 = vmatprep.subr.bf16.mxu0 %v2665_v44 }
 0x194   :  { %1252 = vmatpush1.bf16.msra.mxu1 %v2651_v54  ;;  %v603_v16 = vunpack.c.l.b16 %v546_v4  ;;  %v605_v17 = vunpack.c.l.b16 %v569_v59  ;;  %v574_v29 = vrot.slane %v3116_v55, 2  ;;  %v2673_v54 = vld [vmem:[#allocation6 + $0xf0] sm:$0xff]   ;;  %v2674_v55 = vld [vmem:[#allocation6 + $0x58] sm:$0xff]  }
 0x195   :  { %v537_v2 = vrot.slane %v535_v58, 1  ;;  %v564_v39 = vrot.slane %v533_v43, 1  ;;  %v565_v3 = vrot.slane %v535_v58, 2  ;;  %1253 = vmatprep.subr.bf16.mxu1 %v2656_v57  ;;  %v556_v11 = vsel %vm166_vm1, %v554_v60, %v555_v6  ;;  %v2676_v57 = vld [vmem:[#allocation6 + $0x18] sm:$0xff]   ;;  %v2678_v58 = vld [vmem:[#allocation6 + $0x50] sm:$0xff]  }
 0x196   :  { %v2227_v21 = vcombine.low %v552_v13, %v556_v11  ;;  %v599_v53 = vunpack.c.h.b16 %v556_v11  ;;  %v697_v13 = vpack.c.b16 %v602_v48, %v597_v45  ;;  %v576_v31 = vsel %vm220_vm0, %v574_v29, %v575_v30  ;;  %2397 = vmatpush3.bf16.msra.mxu0 %v2666_v46  ;;  %v2680_v60 = vld [vmem:[#allocation6 + $0x10] sm:$0xff]   ;;  %v2685_v4 = vld [vmem:[#allocation6 + $0xd8] sm:$0xff]  }
 0x197   :  { %v538_v7 = vor.u32 %v537_v2, %v533_v43  ;;  %v566_v8 = vor.u32 %v565_v3, %v564_v39  ;;  %v2229_v32 = vcombine.low %v572_v27, %v576_v31  ;;  %v601_v35 = vunpack.c.h.b16 %v576_v31  ;;  %2398 = vmatprep.subr.bf16.mxu0 %v2667_v47  ;;  %v2677_v43 = vld [vmem:[#allocation6 + $0xe8] sm:$0xff]   ;;  %v2683_v39 = vld [vmem:[#allocation6 + $0xa0] sm:$0xff]   ;;  %v2687_v6 = vld [vmem:[#allocation6 + $0x98] sm:$0xff]  }
 0x198   :  { %1254 = vmatpush1.bf16.msra.mxu1 %v2654_v63  ;;  %v699_v1 = vpack.c.b16 %v604_v51, %v599_v53  ;;  %v2681_v63 = vld [vmem:[#allocation6 + $0xe0] sm:$0xff]   ;;  %v2682_v2 = vld [vmem:[#allocation6 + $0x48] sm:$0xff]   ;;  %v2691_v11 = vld [vmem:[#allocation6 + $0x178] sm:$0xff]  }
 0x199   :  { %v543_v14 = vsel %vm117_vm2, %v538_v7, %v542_v56  ;;  %v570_v15 = vsel %vm185_vm3, %v566_v8, %v569_v59  ;;  %1255 = vmatprep.subr.bf16.mxu1 %v2659_v5  ;;  %v701_v37 = vpack.c.b16 %v606_v36, %v601_v35  ;;  %v2675_v56 = vld [vmem:[#allocation6 + $0xb0] sm:$0xff]   ;;  %v2679_v59 = vld [vmem:[#allocation6 + $0xa8] sm:$0xff]   ;;  %v2686_v5 = vld [vmem:[#allocation6 + $0x40] sm:$0xff]  }
 0x19a   :  { %v2226_v18 = vcombine.low %v531_v9, %v543_v14  ;;  %v2228_v19 = vcombine.low %v3088_v12, %v570_v15  ;;  %v598_v20 = vunpack.c.h.b16 %v543_v14  ;;  %v600_v62 = vunpack.c.h.b16 %v570_v15  ;;  %v2660_v12 = vld [vmem:[#allocation3 + $0x200] ss:$8 sps:$4 sm:$0xff]   ;;  %2399 = vmatpush3.bf16.msra.mxu0 %v2668_v49  ;;  %v2689_v8 = vld [vmem:[#allocation6 + $0xd0] sm:$0xff]   ;;  %v1330_v30 = vld [vmem:[%s3314_s6] sm:$0x3] }
 0x19b   :  { %2400 = vmatprep.subr.bf16.mxu0 %v2670_v50  ;;  %v2684_v3 = vld [vmem:[#allocation6 + $0x8] sm:$0xff]   ;;  %v2688_v7 = vld [vmem:[#allocation6] sm:$0xff]   ;;  %v2690_v9 = vld [vmem:[#allocation6 + $0x90] sm:$0xff]  }
 0x19c   :  { %1159 = vmatprep.mubr.bf16.mxu1 %v2226_v18  ;;  %1222 = vmatprep.mubr.bf16.mxu0 %v2228_v19  ;;  %v698_v23 = vpack.c.b16 %v603_v16, %v598_v20  ;;  %v700_v24 = vpack.c.b16 %v605_v17, %v600_v62  ;;  %v2693_v14 = vld [vmem:[#allocation6 + $0xc8] sm:$0xff]   ;;  %v2697_v16 = vld [vmem:[#allocation6 + $0xc0] sm:$0xff]  }
 0x19d   :  { %2387 = vmatmul.mubr.msk.bf16.gmra.mxu1 %vm2385_vm5, %v2386_v10  ;;  %1223 = vmatmul.mubr.bf16.gmra.mxu0 %v2227_v21  ;;  %v2694_v15 = vld [vmem:[#allocation6 + $0x88] sm:$0xff]   ;;  %v2698_v17 = vld [vmem:[#allocation6 + $0x80] sm:$0xff]  }
 0x19e   :  { %1169 = vmatprep.mubr.bf16.mxu1 %v698_v23  ;;  %1232 = vmatprep.mubr.bf16.mxu0 %v700_v24 }
 0x19f   :  { %1256 = vmatpush1.bf16.msra.mxu1 %v2657_v22  ;;  %2401 = vmatpush3.bf16.msra.mxu0 %v2672_v52 }
 0x1a0   :  { %1257 = vmatprep.subr.bf16.mxu1 %v2662_v25  ;;  %2402 = vmatprep.subr.bf16.mxu0 %v2674_v55 }
 0x1a3   :  { %1258 = vmatpush1.bf16.msra.mxu1 %v2660_v12  ;;  %2403 = vmatpush3.bf16.msra.mxu0 %v2676_v57 }
 0x1a4   :  { %2422 = vmatprep.subr.bf16.mxu1 %v2669_v33  ;;  %2404 = vmatprep.subr.bf16.mxu0 %v2678_v58 }
 0x1a5   :  { %1170 = vmatmul.mubr.bf16.gmra.mxu1 %v697_v13  ;;  %1233 = vmatmul.mubr.bf16.gmra.mxu0 %v699_v1  ;;  %v1310_v1 = vsub.s32 0, %v3036_v38 }
 0x1a6   :  { %1275 = vmatprep.mubr.bf16.mxu1 %v2797_v0 }
 0x1a7   :  { %2405 = vmatpush3.bf16.msra.mxu0 %v2680_v60  ;;  %v3164_v42 = vrot.slane %v1330_v30, %v1310_v1 }
 0x1a8   :  { %2406 = vmatprep.subr.bf16.mxu0 %v2682_v2 }
 0x1ab   :  { %2407 = vmatpush3.bf16.msra.mxu0 %v2684_v3 }
 0x1ac   :  { %2408 = vmatprep.subr.bf16.mxu0 %v2686_v5 }
 0x1ad   :  { %1276 = vmatmul.mubr.bf16.vlgmr.msra.gmra.mxu1 %v573_v28  ;;  %v1314_v28 = vsub.s32 1, %v3036_v38 }
 0x1ae   :  { %1285 = vmatprep.mubr.bf16.mxu1 %v2797_v0  ;;  %2423 = vmatpush3.bf16.msra.mxu1 %v2671_v41  ;;  %v3172_v41 = vadd.s32 4294967295, %v3036_v38 }
 0x1af   :  { %2424 = vmatprep.subr.bf16.mxu1 %v2673_v54  ;;  %2409 = vmatpush3.bf16.msra.mxu0 %v2688_v7  ;;  %v3166_v44 = vrot.slane %v1306_v26, %v1314_v28  ;;  %v3169_v50 = vrot.slane %v1330_v30, %v1314_v28  ;;  %v3182_v7 = vadd.s32 4294967295, %v3039_v40 }
 0x1b0   :  { %2450 = vmatprep.subr.bf16.mxu0 %v2691_v11  ;;  %vm1371_vm0 = vcmp.ge.s32.totalorder %v3172_v41, 0  ;;  %v2703_v41 = vld [vmem:[#allocation6 + $0x158] sm:$0xff]  }
 0x1b1   :  { %vm1376_vm3 = vcmp.lt.s32.totalorder %v3182_v7, 16  ;;  %vm3198_vm6 = vmpackc.low %vm2796_vm15, %vm1371_vm0 }
 0x1b2   :  { %2425 = vmatpush3.bf16.msra.mxu1 %v2675_v56 }
 0x1b3   :  { %2426 = vmatprep.subr.bf16.mxu1 %v2677_v43 }
 0x1b5   :  { %1286 = vmatmul.mubr.bf16.gmra.mxu1 %v2229_v32  ;;  %v3162_v32 = vrot.slane %v1306_v26, %v1310_v1 }
 0x1b6   :  { %1295 = vmatprep.mubr.bf16.mxu1 %v2797_v0  ;;  %2427 = vmatpush3.bf16.msra.mxu1 %v2679_v59 }
 0x1b7   :  { %2428 = vmatprep.subr.bf16.mxu1 %v2681_v63 }
 0x1ba   :  { %2429 = vmatpush3.bf16.msra.mxu1 %v2683_v39 }
 0x1bb   :  { %2430 = vmatprep.subr.bf16.mxu1 %v2685_v4 }
 0x1bd   :  { %1296 = vmatmul.mubr.bf16.gmra.mxu1 %v701_v37 }
 0x1be   :  { %2431 = vmatpush3.bf16.msra.mxu1 %v2687_v6 }
 0x1bf   :  { %2432 = vmatprep.subr.bf16.mxu1 %v2689_v8 }
 0x1c2   :  { %2433 = vmatpush3.bf16.msra.mxu1 %v2690_v9 }
 0x1c3   :  { %2434 = vmatprep.subr.bf16.mxu1 %v2693_v14 }
 0x1c6   :  { %2435 = vmatpush3.bf16.msra.mxu1 %v2694_v15 }
 0x1c7   :  { %2436 = vmatprep.subr.bf16.mxu1 %v2697_v16 }
 0x1ca   :  { %2437 = vmatpush3.bf16.msra.mxu1 %v2698_v17 }
 0x1cb   :  { %2499 = vmatprep.subr.bf16.mxu1 %v2795_v61 }
 0x243   :  { %v1151_v18 = vpop.f32.mrf.mxu1  ;;  %v1214_v20 = vpop.f32.mrf.mxu0 }
 0x244   :  { %v1215_v31 = vadd.f32 %v1214_v20, %v1151_v18 }
 0x245   :  { %v1153_v19 = vpop.f32.mrf.mxu1  ;;  %v1216_v10 = vpop.f32.mrf.mxu0 }
 0x246   :  { %v1217_v36 = vadd.f32 %v1216_v10, %v1153_v19 }
 0x247   :  { %v1155_v62 = vpop.f32.mrf.mxu1  ;;  %v1218_v22 = vpop.f32.mrf.mxu0 }
 0x248   :  { %v1219_v47 = vadd.f32 %v1218_v22, %v1155_v62 }
 0x249   :  { %v1157_v21 = vpop.f32.mrf.mxu1  ;;  %v1220_v25 = vpop.f32.mrf.mxu0 }
 0x24a   :  { %v1221_v54 = vadd.f32 %v1220_v25, %v1157_v21 }
 0x25d   :  { %v1161_v23 = vpop.f32.mrf.mxu1  ;;  %v1224_v53 = vpop.f32.mrf.mxu0 }
 0x25e   :  { %v1225_v2 = vadd.f32 %v1224_v53, %v1161_v23 }
 0x25f   :  { %v1163_v24 = vpop.f32.mrf.mxu1  ;;  %v1226_v51 = vpop.f32.mrf.mxu0 }
 0x260   :  { %v1227_v3 = vadd.f32 %v1226_v51, %v1163_v24 }
 0x261   :  { %v1165_v45 = vpop.f32.mrf.mxu1  ;;  %v1228_v27 = vpop.f32.mrf.mxu0 }
 0x262   :  { %v1229_v17 = vadd.f32 %v1228_v27, %v1165_v45  ;;  %v2692_v27 = vld [vmem:[#allocation6 + $0x138] sm:$0xff]  }
 0x263   :  { %v1167_v12 = vpop.f32.mrf.mxu1  ;;  %v1230_v37 = vpop.f32.mrf.mxu0 }
 0x264   :  { %v1231_v22 = vadd.f32 %v1230_v37, %v1167_v12  ;;  %v2695_v37 = vld [vmem:[#allocation6 + $0x170] sm:$0xff]  }
 0x265   :  { %v3146_v48 = vpop.f32.mrf.mxu1  ;;  %v1234_v55 = vpop.f32.mrf.mxu0 }
 0x266   :  { %v1235_v51 = vadd.f32 %v1234_v55, %v3146_v48 }
 0x267   :  { %v3148_v13 = vpop.f32.mrf.mxu1  ;;  %v1236_v4 = vpop.f32.mrf.mxu0 }
 0x269   :  { %v3151_v0 = vpop.f32.mrf.mxu1  ;;  %v1238_v62 = vpop.f32.mrf.mxu0 }
 0x26b   :  { %v3157_v29 = vpop.f32.mrf.mxu1 }
 0x26d   :  { %v1277_v35 = vpop.f32.mrf.mxu1 }
 0x26e   :  { %v1278_v34 = vadd.f32 %v1277_v35, %v1215_v31 }
 0x26f   :  { %v1279_v46 = vpop.f32.mrf.mxu1 }
 0x270   :  { %v1318_v49 = vmul.f32 %v3162_v32, %v1278_v34  ;;  %v1280_v33 = vadd.f32 %v1279_v46, %v1217_v36  ;;  %v1237_v34 = vadd.f32 %v1236_v4, %v3148_v13  ;;  %v1240_v46 = vpop.f32.mrf.mxu0  ;;  %v1239_v13 = vadd.f32 %v1238_v62, %v3151_v0 }
 0x271   :  { %v1281_v52 = vpop.f32.mrf.mxu1 }
 0x272   :  { %v1342_v56 = vadd.f32 %v3164_v42, %v1318_v49  ;;  %v1319_v57 = vmul.f32 %v3166_v44, %v1280_v33  ;;  %v1282_v43 = vadd.f32 %v1281_v52, %v1219_v47 }
 0x273   :  { %v1283_v58 = vpop.f32.mrf.mxu1 }
 0x274   :  { %v1343_v59 = vadd.f32 %v3169_v50, %v1319_v57  ;;  %v1320_v60 = vmul.f32 %v3162_v32, %v1282_v43  ;;  %v1284_v63 = vadd.f32 %v1283_v58, %v1221_v54  ;;  %v1354_v39 = vmax.f32 %v1342_v56, 0.0 }
 0x275   :  { %v1287_v38 = vpop.f32.mrf.mxu1 }
 0x276   :  { %v1344_v5 = vadd.f32 %v3164_v42, %v1320_v60  ;;  %v1321_v6 = vmul.f32 %v3166_v44, %v1284_v63  ;;  %v1355_v8 = vmax.f32 %v1343_v59, 0.0  ;;  %v1288_v9 = vadd.f32 %v1287_v38, %v1225_v2  ;;  %v2696_v59 = vld [vmem:[#allocation6 + $0x130] sm:$0xff]  }
 0x277   :  { %v1289_v11 = vpop.f32.mrf.mxu1  ;;  %v1386_v18 = vsel %vm1371_vm0, %v1354_v39, 0.0  ;;  %v1241_v60 = vadd.f32 %v1240_v46, %v3157_v29 }
 0x278   :  { %v1356_v14 = vmax.f32 %v1344_v5, 0.0  ;;  %v1345_v15 = vadd.f32 %v3169_v50, %v1321_v6  ;;  %v1290_v16 = vadd.f32 %v1289_v11, %v1227_v3  ;;  %v1322_v19 = vmul.f32 %v3162_v32, %v1288_v9  ;;  %v2699_v3 = vld [vmem:[#allocation6 + $0x168] sm:$0xff]  }
 0x279   :  { %v1291_v20 = vpop.f32.mrf.mxu1  ;;  %v1387_v23 = vsel %vm1371_vm0, %v1355_v8, 0.0 }
 0x27a   :  { %v3188_v10 = vpack.c.bf16 %v1356_v14, %v1386_v18  ;;  %v1357_v21 = vmax.f32 %v1345_v15, 0.0  ;;  %v1323_v40 = vmul.f32 %v3166_v44, %v1290_v16  ;;  %v1346_v24 = vadd.f32 %v3164_v42, %v1322_v19  ;;  %v2700_v18 = vld [vmem:[#allocation6 + $0x128] sm:$0xff]  }
 0x27b   :  { %v1292_v25 = vadd.f32 %v1291_v20, %v1229_v17  ;;  %v1293_v45 = vpop.f32.mrf.mxu1  ;;  %v2365_v1 = vpack.c.bf16 %v1356_v14, %v1354_v39 }
 0x27c   :  { %v3203_v26 = vpack.c.bf16 %v1357_v21, %v1387_v23  ;;  %v2362_v12 = vpack.c.bf16 %v1357_v21, %v1355_v8  ;;  %v1358_v28 = vmax.f32 %v1346_v24, 0.0  ;;  %v1347_v30 = vadd.f32 %v3169_v50, %v1323_v40 }
 0x27d   :  { %v1324_v31 = vmul.f32 %v3162_v32, %v1292_v25  ;;  %v1294_v35 = vadd.f32 %v1293_v45, %v1231_v22  ;;  %v1297_v36 = vpop.f32.mrf.mxu1  ;;  %v1409_v47 = vshll.u32 %v3188_v10, 16  ;;  %v1407_v8 = vshrl.u32 %v3188_v10, 16  ;;  %v2701_v22 = vld [vmem:[#allocation6 + $0x160] sm:$0xff]  }
 0x27e   :  { %v1298_v49 = vadd.f32 %v1297_v36, %v1235_v51  ;;  %2363 = vmatprep.mubr.msk.bf16.mxu0 %vm3198_vm6, %v2362_v12  ;;  %v1421_v48 = vshll.u32 %v3203_v26, 16  ;;  %v1390_v33 = vsel %vm1376_vm3, %v1358_v28, 0.0  ;;  %v1359_v52 = vmax.f32 %v1347_v30, 0.0 }
 0x27f   :  { %v1348_v54 = vadd.f32 %v3164_v42, %v1324_v31  ;;  %v1325_v55 = vmul.f32 %v3166_v44, %v1294_v35  ;;  %v1299_v56 = vpop.f32.mrf.mxu1  ;;  %2366 = vmatmul.mubr.msk.bf16.vlgmr.msra.gmra.mxu0 %vm3198_vm6, %v2365_v1  ;;  %v3219_v57 = vpack.c.bf16 %v1390_v33, %v1390_v33  ;;  %v1411_v4 = vrot.slane %v1409_v47, 1 }
 0x280   :  { %v1326_v43 = vmul.f32 %v3162_v32, %v1298_v49  ;;  %v1300_v58 = vadd.f32 %v1299_v56, %v1237_v34  ;;  %2451 = vmatpush3.bf16.msra.mxu0 %v2692_v27  ;;  %v1391_v63 = vsel %vm1376_vm3, %v1359_v52, 0.0  ;;  %v1423_v14 = vrot.slane %v1421_v48, 1 }
 0x281   :  { %v1360_v2 = vmax.f32 %v1348_v54, 0.0  ;;  %v1349_v39 = vadd.f32 %v3169_v50, %v1325_v55  ;;  %v1301_v38 = vpop.f32.mrf.mxu1  ;;  %2452 = vmatprep.subr.bf16.mxu0 %v2695_v37  ;;  %v1414_v0 = vshll.u32 %v3219_v57, 16  ;;  %v1401_v5 = vpack.c.bf16 %v1391_v63, %v1391_v63  ;;  %v2704_v55 = vld [vmem:[#allocation6 + $0x118] sm:$0xff]  }
 0x282   :  { %v1350_v6 = vadd.f32 %v3164_v42, %v1326_v43  ;;  %v1327_v9 = vmul.f32 %v3166_v44, %v1300_v58  ;;  %v1302_v29 = vadd.f32 %v1301_v38, %v1239_v13  ;;  %v1419_v19 = vshrl.u32 %v3203_v26, 16  ;;  %v2705_v13 = vld [vmem:[#allocation6 + $0x150] sm:$0xff]  }
 0x283   :  { %v1303_v11 = vpop.f32.mrf.mxu1  ;;  %v1361_v15 = vmax.f32 %v1349_v39, 0.0  ;;  %v1392_v20 = vsel %vm1371_vm0, %v1360_v2, 0.0  ;;  %v1426_v40 = vshll.u32 %v1401_v5, 16  ;;  %v1416_v23 = vrot.slane %v1414_v0, 1 }
 0x284   :  { %v1362_v16 = vmax.f32 %v1350_v6, 0.0  ;;  %v1304_v17 = vadd.f32 %v1303_v11, %v1241_v60  ;;  %2453 = vmatpush3.bf16.msra.mxu0 %v2696_v59  ;;  %v1351_v62 = vadd.f32 %v3169_v50, %v1327_v9  ;;  %v1328_v21 = vmul.f32 %v3162_v32, %v1302_v29  ;;  %v2709_v6 = vld [vmem:[#allocation6 + $0x140] sm:$0xff]  }
 0x285   :  { %2454 = vmatprep.subr.bf16.mxu0 %v2699_v3  ;;  %v1412_v45 = vor.u32 %v1411_v4, %v1407_v8  ;;  %v1424_v12 = vor.u32 %v1423_v14, %v1419_v19  ;;  %v1428_v27 = vrot.slane %v1426_v40, 1  ;;  %v1393_v28 = vsel %vm1371_vm0, %v1361_v15, 0.0  ;;  %v2707_v3 = vld [vmem:[#allocation6 + $0x148] sm:$0xff]   ;;  %v2710_v8 = vld [vmem:[#allocation6 + $0x100] sm:$0xff]  }
 0x286   :  { %v3235_v24 = vpack.c.bf16 %v1362_v16, %v1392_v20  ;;  %v1329_v25 = vmul.f32 %v3166_v44, %v1304_v17  ;;  %v1363_v51 = vmax.f32 %v1351_v62, 0.0  ;;  %v1352_v1 = vadd.f32 %v3164_v42, %v1328_v21  ;;  %v2702_v44 = vld [vmem:[#allocation6 + $0x120] sm:$0xff]   ;;  %v2715_v21 = vld [vmem:[%s3318_s10 + $0x18] sm:$0xff]   ;;  %v2716_v40 = vld [vmem:[%s3318_s10 + $0x10] sm:$0xff]  }
 0x287   :  { %v2371_v30 = vpack.c.bf16 %v1362_v16, %v1360_v2  ;;  %v1470_v31 = vrot.slane %v1401_v5, 1  ;;  %v1429_v34 = vsel %vm117_vm2, %v1424_v12, %v1428_v27  ;;  %v1417_v42 = vsel %vm117_vm2, %v1412_v45, %v1416_v23  ;;  %v2706_v2 = vld [vmem:[#allocation6 + $0x110] sm:$0xff]   ;;  %v2708_v5 = vld [vmem:[#allocation6 + $0x108] sm:$0xff]   ;;  %v2714_v62 = vld [vmem:[%s3318_s10 + $0x20] sm:$0xff]  }
 0x288   :  { %v1353_v32 = vadd.f32 %v3169_v50, %v1329_v25  ;;  %2455 = vmatpush3.bf16.msra.mxu0 %v2700_v18  ;;  %v1403_v35 = vpack.c.bf16 %v1363_v51, %v1393_v28  ;;  %v2368_v36 = vpack.c.bf16 %v1363_v51, %v1361_v15  ;;  %v1364_v37 = vmax.f32 %v1352_v1, 0.0  ;;  %1947 = vmatprep.mubr.bf16.mxu1 %v1429_v34  ;;  %v2713_v20 = vld [vmem:[%s3318_s10 + $0x28] sm:$0xff]   ;;  %v2718_v23 = vld [vmem:[%s3318_s10] sm:$0xff]  }
 0x289   :  { %2456 = vmatprep.subr.bf16.mxu0 %v2701_v22  ;;  %v1469_v47 = vrot.slane %v3203_v26, 1  ;;  %v1433_v49 = vshll.u32 %v3235_v24, 16  ;;  %1948 = vmatmul.mubr.bf16.vlgmr.msra.gmra.mxu1 %v1417_v42  ;;  %v1431_v63 = vshrl.u32 %v3235_v24, 16  ;;  %v1467_v9 = vrot.slane %v3219_v57, 1  ;;  %v2711_v57 = vld [vmem:[%s3318_s10 + $0x38] sm:$0xff]   ;;  %v2717_v22 = vld [vmem:[%s3318_s10 + $0x8] sm:$0xff]  }
 0x28a   :  { %v1365_v46 = vmax.f32 %v1353_v32, 0.0  ;;  %v1396_v50 = vsel %vm1376_vm3, %v1364_v37, 0.0  ;;  %2369 = vmatprep.mubr.msk.bf16.mxu0 %vm3198_vm6, %v2368_v36  ;;  %v1445_v48 = vshll.u32 %v1403_v35, 16  ;;  %v1443_v59 = vshrl.u32 %v1403_v35, 16  ;;  %2500 = vmatpush3.bf16.msra.mxu1 %v2711_v57 }
 0x28b   :  { %v1404_v33 = vpack.c.bf16 %v1396_v50, %v1396_v50  ;;  %2372 = vmatmul.mubr.msk.bf16.gmra.mxu0 %vm3198_vm6, %v2371_v30  ;;  %v1471_v26 = vsel %vm166_vm1, %v1469_v47, %v1470_v31  ;;  %v1435_v43 = vrot.slane %v1433_v49, 1  ;;  %v1466_v11 = vrot.slane %v3188_v10, 1  ;;  %2501 = vmatprep.subr.bf16.mxu1 %v2795_v61  ;;  %v2712_v10 = vld [vmem:[%s3318_s10 + $0x30] sm:$0xff]   ;;  %v2373_v50 = vld [vmem:[%s3316_s8] ss:$0 sm:$0xff] }
 0x28c   :  { %v1397_v52 = vsel %vm1376_vm3, %v1365_v46, 0.0  ;;  %2457 = vmatpush3.bf16.msra.mxu0 %v2702_v44  ;;  %1996 = vmatprep.mubr.bf16.mxu0 %v1471_v26  ;;  %v1447_v56 = vrot.slane %v1445_v48, 1  ;;  %v1475_v14 = vrot.slane %v1403_v35, 1  ;;  %v1472_v18 = vrot.slane %v3235_v24, 1 }
 0x28d   :  { %v1405_v54 = vpack.c.bf16 %v1397_v52, %v1397_v52  ;;  %2458 = vmatprep.subr.bf16.mxu0 %v2703_v41  ;;  %v1438_v58 = vshll.u32 %v1404_v33, 16  ;;  %v1436_v38 = vor.u32 %v1435_v43, %v1431_v63  ;;  %v1468_v15 = vsel %vm166_vm1, %v1466_v11, %v1467_v9 }
 0x28e   :  { %v1448_v53 = vor.u32 %v1447_v56, %v1443_v59  ;;  %v1473_v17 = vrot.slane %v1404_v33, 1  ;;  %2502 = vmatpush3.bf16.msra.mxu1 %v2712_v10 }
 0x28f   :  { %v1450_v60 = vshll.u32 %v1405_v54, 16  ;;  %v1440_v7 = vrot.slane %v1438_v58, 1  ;;  %v1476_v29 = vrot.slane %v1405_v54, 1  ;;  %2503 = vmatprep.subr.bf16.mxu1 %v2795_v61  ;;  %v2374_v58 = vld [vmem:[%s3317_s9] ss:$0 sm:$0xff] }
 0x290   :  { %2459 = vmatpush3.bf16.msra.mxu0 %v2704_v55  ;;  %v1474_v19 = vsel %vm166_vm1, %v1472_v18, %v1473_v17 }
 0x291   :  { %v1452_v39 = vrot.slane %v1450_v60, 1  ;;  %2460 = vmatprep.subr.bf16.mxu0 %v2705_v13  ;;  %v1441_v0 = vsel %vm117_vm2, %v1436_v38, %v1440_v7  ;;  %v1477_v16 = vsel %vm166_vm1, %v1475_v14, %v1476_v29  ;;  %vm2798_vm1 = vmmov 0  }
 0x292   :  { %2504 = vmatpush3.bf16.msra.mxu1 %v2713_v20 }
 0x293   :  { %v1453_v4 = vsel %vm117_vm2, %v1448_v53, %v1452_v39  ;;  %2505 = vmatprep.subr.bf16.mxu1 %v2795_v61  ;;  %vm2069_vm2 = vcmask 1041409  }
 0x294   :  { %1955 = vmatprep.mubr.bf16.mxu1 %v1453_v4  ;;  %2461 = vmatpush3.bf16.msra.mxu0 %v2706_v2 }
 0x295   :  { %1956 = vmatmul.mubr.bf16.gmra.mxu1 %v1441_v0  ;;  %2462 = vmatprep.subr.bf16.mxu0 %v2707_v3 }
 0x296   :  { %2515 = vmatprep.mubr.msk.bf16.mxu1 %vm2798_vm1, %v2795_v61  ;;  %2506 = vmatpush3.bf16.msra.mxu1 %v2714_v62 }
 0x297   :  { %2507 = vmatprep.subr.bf16.mxu1 %v2795_v61 }
 0x298   :  { %2463 = vmatpush3.bf16.msra.mxu0 %v2708_v5 }
 0x299   :  { %2464 = vmatprep.subr.bf16.mxu0 %v2709_v6 }
 0x29a   :  { %2508 = vmatpush3.bf16.msra.mxu1 %v2715_v21 }
 0x29b   :  { %2509 = vmatprep.subr.bf16.mxu1 %v2795_v61 }
 0x29c   :  { %2465 = vmatpush3.bf16.msra.mxu0 %v2710_v8 }
 0x29e   :  { %2510 = vmatpush3.bf16.msra.mxu1 %v2716_v40 }
 0x29f   :  { %1997 = vmatmul.mubr.bf16.vlgmr.msra.gmra.mxu0 %v1468_v15  ;;  %2511 = vmatprep.subr.bf16.mxu1 %v2795_v61 }
 0x2a0   :  { %2004 = vmatprep.mubr.bf16.mxu0 %v1477_v16 }
 0x2a2   :  { %2512 = vmatpush3.bf16.msra.mxu1 %v2717_v22 }
 0x2a3   :  { %2513 = vmatprep.subr.bf16.mxu1 %v2795_v61 }
 0x2a6   :  { %2514 = vmatpush3.bf16.msra.mxu1 %v2718_v23 }
 0x2a7   :  { %2005 = vmatmul.mubr.bf16.gmra.mxu0 %v1474_v19 }
 0x33f   :  { %v2410_v24 = vpop.f32.mrf.mxu0 }
 0x341   :  { %v2411_v25 = vpop.f32.mrf.mxu0 }
 0x342   :  { %v2412_v46 = vadd.f32 %v2411_v25, %v2410_v24 }
 0x343   :  { %v2413_v45 = vpop.f32.mrf.mxu0 }
 0x345   :  { %v2414_v1 = vpop.f32.mrf.mxu0 }
 0x346   :  { %v2415_v33 = vadd.f32 %v2414_v1, %v2413_v45 }
 0x349   :  { %v2438_v51 = vpop.f32.mrf.mxu1 }
 0x34b   :  { %v2439_v12 = vpop.f32.mrf.mxu1  ;;  %v2416_v27 = vpop.f32.mrf.mxu0 }
 0x34c   :  { %v2440_v37 = vadd.f32 %v2439_v12, %v2438_v51 }
 0x34d   :  { %v2441_v28 = vpop.f32.mrf.mxu1  ;;  %v2417_v30 = vpop.f32.mrf.mxu0 }
 0x34e   :  { %v1950_v61 = vadd.f32 %v2440_v37, %v2412_v46  ;;  %v2418_v60 = vadd.f32 %v2417_v30, %v2416_v27 }
 0x34f   :  { %v2442_v32 = vpop.f32.mrf.mxu1  ;;  %v2419_v31 = vpop.f32.mrf.mxu0 }
 0x350   :  { %v2443_v47 = vadd.f32 %v2442_v32, %v2441_v28  ;;  %v2052_v28 = vld [vmem:[#allocation2] sm:$0x3] }
 0x351   :  { %v2420_v36 = vpop.f32.mrf.mxu0 }
 0x352   :  { %v1953_v54 = vadd.f32 %v2443_v47, %v2415_v33  ;;  %v2421_v4 = vadd.f32 %v2420_v36, %v2419_v31 }
 0x355   :  { %v2444_v35 = vpop.f32.mrf.mxu1 }
 0x357   :  { %v2445_v34 = vpop.f32.mrf.mxu1 }
 0x358   :  { %v2446_v55 = vadd.f32 %v2445_v34, %v2444_v35  ;;  %v2375_v34 = vld [vmem:[%s3319_s11] ss:$0 sm:$0xff] }
 0x359   :  { %v2447_v41 = vpop.f32.mrf.mxu1 }
 0x35a   :  { %v1958_v53 = vadd.f32 %v2446_v55, %v2418_v60 }
 0x35b   :  { %v2448_v56 = vpop.f32.mrf.mxu1 }
 0x35c   :  { %v2449_v7 = vadd.f32 %v2448_v56, %v2447_v41 }
 0x35e   :  { %v1961_v8 = vadd.f32 %v2449_v7, %v2421_v4 }
 0x35f   :  { %v2466_v44 = vpop.f32.mrf.mxu0 }
 0x361   :  { %v2467_v42 = vpop.f32.mrf.mxu0 }
 0x362   :  { %v2468_v49 = vadd.f32 %v2467_v42, %v2466_v44 }
 0x363   :  { %v2469_v48 = vpop.f32.mrf.mxu0 }
 0x364   :  { %v1999_v52 = vadd.f32 %v2468_v49, %v1950_v61 }
 0x365   :  { %v2470_v26 = vpop.f32.mrf.mxu0 }
 0x366   :  { %v2020_v13 = vmul.f32 %v2373_v50, %v1999_v52  ;;  %v2471_v43 = vadd.f32 %v2470_v26, %v2469_v48 }
 0x367   :  { %v2472_v59 = vpop.f32.mrf.mxu0 }
 0x368   :  { %v2002_v63 = vadd.f32 %v2471_v43, %v1953_v54  ;;  %v2031_v39 = vadd.f32 %v2374_v58, %v2020_v13 }
 0x369   :  { %v2473_v2 = vpop.f32.mrf.mxu0 }
 0x36a   :  { %v2021_v38 = vmul.f32 %v2373_v50, %v2002_v63  ;;  %v2474_v3 = vadd.f32 %v2473_v2, %v2472_v59  ;;  %v2035_v29 = vmax.f32 %v2031_v39, 0.0 }
 0x36b   :  { %v2475_v0 = vpop.f32.mrf.mxu0 }
 0x36c   :  { %v2032_v5 = vadd.f32 %v2374_v58, %v2021_v38  ;;  %v2007_v6 = vadd.f32 %v2474_v3, %v1958_v53 }
 0x36d   :  { %v2476_v9 = vpop.f32.mrf.mxu0 }
 0x36e   :  { %v2036_v11 = vmax.f32 %v2032_v5, 0.0  ;;  %v2022_v14 = vmul.f32 %v2373_v50, %v2007_v6  ;;  %v2477_v15 = vadd.f32 %v2476_v9, %v2475_v0 }
 0x370   :  { %v2053_v16 = vadd.f32 %v2036_v11, %v2035_v29  ;;  %v2010_v17 = vadd.f32 %v2477_v15, %v1961_v8  ;;  %v2033_v19 = vadd.f32 %v2374_v58, %v2022_v14 }
 0x372   :  { %v2054_v18 = vrot.slane %v2053_v16, 4  ;;  %v2023_v57 = vmul.f32 %v2373_v50, %v2010_v17  ;;  %v2037_v62 = vmax.f32 %v2033_v19, 0.0 }
 0x374   :  { %v2055_v10 = vadd.f32 %v2054_v18, %v2053_v16  ;;  %v2034_v20 = vadd.f32 %v2374_v58, %v2023_v57 }
 0x376   :  { %v2038_v21 = vmax.f32 %v2034_v20, 0.0  ;;  %v2056_v40 = vrot.slane %v2055_v10, 2 }
 0x378   :  { %v2060_v22 = vadd.f32 %v2038_v21, %v2037_v62  ;;  %v2057_v24 = vadd.f32 %v2056_v40, %v2055_v10 }
 0x37a   :  { %v2061_v23 = vrot.slane %v2060_v22, 4  ;;  %v2058_v51 = vrot.slane %v2057_v24, 1 }
 0x37c   :  { %v2062_v25 = vadd.f32 %v2061_v23, %v2060_v22  ;;  %v2059_v27 = vadd.f32 %v2058_v51, %v2057_v24 }
 0x37e   :  { %v2063_v45 = vrot.slane %v2062_v25, 2 }
 0x380   :  { %v2064_v1 = vadd.f32 %v2063_v45, %v2062_v25 }
 0x382   :  { %v2065_v12 = vrot.slane %v2064_v1, 1 }
 0x384   :  { %v2066_v30 = vadd.f32 %v2065_v12, %v2064_v1 }
 0x386   :  { %v2070_v32 = vsel %vm2069_vm2, %v2066_v30, %v2059_v27 }
 0x387   :  { %v2072_v31 = vadd.f32 %v2070_v32, %v2052_v28 }
 0x389   :  { %2073 = vst [vmem:[#allocation2] sm:$0x3] %v2072_v31 }
 0x390   :  { %v2077_v35 = vld [vmem:[#allocation2] sm:$0x3] }
 0x391   :  { %v2078_v36 = vmul.f32 0.0625, %v2077_v35 }
 0x393   :  { %v2079_v37 = vpack.c.bf16 %v2078_v36, %v2078_v36 }
 0x395   :  { %2516 = vmatmul.mubr.bf16.vlgmr.msra.gmra.mxu1 %v2079_v37 }
 0x455   :  { %v2185_v44 = vpop.f32.mrf.mxu1 }
 0x456   :  { %v2186_v46 = vadd.f32 %v2375_v34, %v2185_v44 }
 0x457   :  { %v2517_v42 = vpop.f32.mrf.mxu1 }
 0x458   :  { %2192 = vst.msk [vmem:[#allocation8] sm:$0x3] %vm2191_vm7, %v2186_v46 }
 0x459   :  { %v2188_v61 = vpop.f32.mrf.mxu1 }
 0x45a   :  { %2770 = shalt.err (!%p2767_p0)
}
 0x45b   :  { %2202 = dma.vmem_to_hbm [thread:$0]  %s2200_s14, 32, %s3320_s12, [#allocation5]   ;;  %v2518_v47 = vpop.f32.mrf.mxu1 }
 0x45c   :  { %2783 = dma.done.wait [#allocation5], 32  }
 0x45d   :  { %2784 = vsyncadd [#allocation5], 4294967264 }
 0x45e   :  { %2206 = vsyncpa [#allocation4], 1 }
 0x45f   :  { %2207 = vsyncpa [#allocation7], 1 }
 0x460   :  { %2208 = vsyncpa [#allocation5], 1 }

</bundles_post_ra>
